<compile_context>
chip_gen: v5e
topology: v5e:2x2
jax: 0.10.0
libtpu: 0.0.40
codegen_flags: <defaults>
</compile_context>

<pallas_src>
import functools
import math

import numpy as np
import jax
import jax.numpy as jnp
from jax import lax
from jax.experimental import pallas as pl
from jax.experimental.pallas import tpu as pltpu

EPS = 1e-5
# Explicit scoped-VMEM budget: above v5e's 16 MiB default, safely below every
# chip's physical VMEM (v7x = 64 MiB).
VMEM_LIMIT = 48 * 1024 * 1024


def _pick_rows(m, pref=512):
    """Largest row-tile <= pref that divides m and keeps sublane alignment."""
    for cand in (pref, 256, 128, 64, 32, 16, 8):
        if cand <= m and m % cand == 0:
            return cand
    return m


def _layernorm(v, g, b):
    mu = jnp.mean(v, axis=-1, keepdims=True)
    var = jnp.mean((v - mu) ** 2, axis=-1, keepdims=True)
    return (v - mu) * lax.rsqrt(var + EPS) * g + b


# ----------------------------- Pallas kernels -------------------------------

def _patch_embed_kernel(p_ref, w_ref, b_ref, g_ref, beta_ref, o_ref):
    # (bm, K) @ (K, D) + bias, then LayerNorm over D.  Weights are bf16,
    # accumulation in f32, LN in f32.
    y = jnp.dot(p_ref[...].astype(jnp.bfloat16), w_ref[...],
                preferred_element_type=jnp.float32) + b_ref[...]
    o_ref[...] = _layernorm(y, g_ref[...], beta_ref[...]).astype(o_ref.dtype)


def patch_embed(patches2d, w, b, gamma, beta):
    M, K = patches2d.shape
    D = w.shape[1]
    bm = _pick_rows(M)
    return pl.pallas_call(
        _patch_embed_kernel,
        grid=(M // bm,),
        in_specs=[
            pl.BlockSpec((bm, K), lambda i: (i, 0)),
            pl.BlockSpec((K, D), lambda i: (0, 0)),
            pl.BlockSpec((1, D), lambda i: (0, 0)),
            pl.BlockSpec((1, D), lambda i: (0, 0)),
            pl.BlockSpec((1, D), lambda i: (0, 0)),
        ],
        out_specs=pl.BlockSpec((bm, D), lambda i: (i, 0)),
        out_shape=jax.ShapeDtypeStruct((M, D), jnp.float32),
        compiler_params=pltpu.CompilerParams(
            dimension_semantics=("parallel",), vmem_limit_bytes=VMEM_LIMIT),
    )(patches2d, w, b, gamma, beta)


def _merge_kernel(x_ref, g_ref, b_ref, w_ref, o_ref):
    # LayerNorm(4D) -> Linear(4D, 2D) with no bias (Swin patch merging)
    xn = _layernorm(x_ref[...], g_ref[...], b_ref[...])
    o_ref[...] = jnp.dot(xn.astype(jnp.bfloat16), w_ref[...],
                         preferred_element_type=jnp.float32).astype(o_ref.dtype)


def patch_merge_proj(x2d, gamma, beta, w):
    M, K4 = x2d.shape
    Dout = w.shape[1]
    bm = _pick_rows(M)
    return pl.pallas_call(
        _merge_kernel,
        grid=(M // bm,),
        in_specs=[
            pl.BlockSpec((bm, K4), lambda i: (i, 0)),
            pl.BlockSpec((1, K4), lambda i: (0, 0)),
            pl.BlockSpec((1, K4), lambda i: (0, 0)),
            pl.BlockSpec((K4, Dout), lambda i: (0, 0)),
        ],
        out_specs=pl.BlockSpec((bm, Dout), lambda i: (i, 0)),
        out_shape=jax.ShapeDtypeStruct((M, Dout), jnp.float32),
        compiler_params=pltpu.CompilerParams(
            dimension_semantics=("parallel",), vmem_limit_bytes=VMEM_LIMIT),
    )(x2d, gamma, beta, w)


def _attn_kernel(x_ref, g1_ref, b1_ref, wqkv_ref, bqkv_ref, wo_ref, bo_ref,
                 rb_ref, o_ref, ctx_ref, *, num_heads):
    # W-MSA over one batch element (window == whole feature map => one window).
    x = x_ref[0]                                   # (N, D) f32
    N, D = x.shape
    hd = D // num_heads
    scale = 1.0 / math.sqrt(hd)

    xn = _layernorm(x, g1_ref[...], b1_ref[...])
    # Fused QKV projection: one (N,D)@(D,3D) bf16 matmul, f32 accumulation.
    qkv = jnp.dot(xn.astype(jnp.bfloat16), wqkv_ref[...],
                  preferred_element_type=jnp.float32) + bqkv_ref[...]
    q = qkv[:, :D] * scale                         # fold 1/sqrt(hd) into q
    k = qkv[:, D:2 * D]
    v = qkv[:, 2 * D:]

    # Per-head attention; each head's context is stored directly into a VMEM
    # scratch column slice (no concatenate).  Few heads -> full unroll.
    for h in range(num_heads):
        qh = q[:, h * hd:(h + 1) * hd].astype(jnp.bfloat16)
        kh = k[:, h * hd:(h + 1) * hd].astype(jnp.bfloat16)
        vh = v[:, h * hd:(h + 1) * hd].astype(jnp.bfloat16)
        # qh @ kh.T without explicit transpose
        s = lax.dot_general(qh, kh, (((1,), (1,)), ((), ())),
                            preferred_element_type=jnp.float32)
        s = s + rb_ref[h]                          # relative position bias
        s = s - jnp.max(s, axis=-1, keepdims=True)
        p = jnp.exp(s)
        p = p * pl.reciprocal(jnp.sum(p, axis=-1, keepdims=True), approx=True)
        ctx_ref[:, h * hd:(h + 1) * hd] = jnp.dot(
            p.astype(jnp.bfloat16), vh, preferred_element_type=jnp.float32)

    attn = jnp.dot(ctx_ref[...].astype(jnp.bfloat16), wo_ref[...],
                   preferred_element_type=jnp.float32) + bo_ref[...]
    o_ref[0] = (x + attn).astype(o_ref.dtype)


def swin_attention(x, bp, num_heads):
    B, N, D = x.shape
    kernel = functools.partial(_attn_kernel, num_heads=num_heads)
    ce = pl.CostEstimate(
        flops=int(8 * B * N * D * D + 4 * B * N * N * D),
        transcendentals=int(B * num_heads * N * N),
        bytes_accessed=int(2 * B * N * D * 4 + 4 * D * D * 2
                           + num_heads * N * N * 4),
    )
    return pl.pallas_call(
        kernel,
        grid=(B,),
        in_specs=[
            pl.BlockSpec((1, N, D), lambda b: (b, 0, 0)),
            pl.BlockSpec((1, D), lambda b: (0, 0)),
            pl.BlockSpec((1, D), lambda b: (0, 0)),
            pl.BlockSpec((D, 3 * D), lambda b: (0, 0)),
            pl.BlockSpec((1, 3 * D), lambda b: (0, 0)),
            pl.BlockSpec((D, D), lambda b: (0, 0)),
            pl.BlockSpec((1, D), lambda b: (0, 0)),
            pl.BlockSpec((num_heads, N, N), lambda b: (0, 0, 0)),
        ],
        out_specs=pl.BlockSpec((1, N, D), lambda b: (b, 0, 0)),
        out_shape=jax.ShapeDtypeStruct((B, N, D), jnp.float32),
        scratch_shapes=[pltpu.VMEM((N, D), jnp.float32)],
        compiler_params=pltpu.CompilerParams(
            dimension_semantics=("parallel",), vmem_limit_bytes=VMEM_LIMIT),
        cost_estimate=ce,
    )(x, bp['g1'], bp['b1'], bp['wqkv'], bp['bqkv'], bp['wo'], bp['bo'],
      bp['rb'])


def _mlp_kernel(x_ref, g2_ref, b2_ref, w1_ref, bm1_ref, w2_ref, bm2_ref, o_ref):
    x = x_ref[...]                                 # (bm, D) f32
    xn = _layernorm(x, g2_ref[...], b2_ref[...])
    h = jnp.dot(xn.astype(jnp.bfloat16), w1_ref[...],
                preferred_element_type=jnp.float32) + bm1_ref[...]
    # TODO(synk): HF Swin uses exact (erf) GELU; tanh approximation used here.
    h = jax.nn.gelu(h, approximate=True)
    y = jnp.dot(h.astype(jnp.bfloat16), w2_ref[...],
                preferred_element_type=jnp.float32) + bm2_ref[...]
    o_ref[...] = (x + y).astype(o_ref.dtype)


def swin_mlp(x, bp):
    B, N, D = x.shape
    M = B * N
    hidden = bp['w1'].shape[1]
    bm = _pick_rows(M)
    x2d = x.reshape(M, D)
    ce = pl.CostEstimate(
        flops=int(4 * M * D * hidden),
        transcendentals=int(M * hidden),
        bytes_accessed=int(2 * M * D * 4 + 2 * D * hidden * 2),
    )
    out = pl.pallas_call(
        _mlp_kernel,
        grid=(M // bm,),
        in_specs=[
            pl.BlockSpec((bm, D), lambda i: (i, 0)),
            pl.BlockSpec((1, D), lambda i: (0, 0)),
            pl.BlockSpec((1, D), lambda i: (0, 0)),
            pl.BlockSpec((D, hidden), lambda i: (0, 0)),
            pl.BlockSpec((1, hidden), lambda i: (0, 0)),
            pl.BlockSpec((hidden, D), lambda i: (0, 0)),
            pl.BlockSpec((1, D), lambda i: (0, 0)),
        ],
        out_specs=pl.BlockSpec((bm, D), lambda i: (i, 0)),
        out_shape=jax.ShapeDtypeStruct((M, D), jnp.float32),
        compiler_params=pltpu.CompilerParams(
            dimension_semantics=("parallel",), vmem_limit_bytes=VMEM_LIMIT),
        cost_estimate=ce,
    )(x2d, bp['g2'], bp['b2'], bp['w1'], bp['bm1'], bp['w2'], bp['bm2'])
    return out.reshape(B, N, D)


# --------------------------------- glue -------------------------------------

def patchify(x, P):
    # NCHW -> (B, L, C*P*P), flattening each patch in (c, pi, pj) order to
    # match Conv2d(kernel=P, stride=P) as a matmul.
    B, C, H, W = x.shape
    gh, gw = H // P, W // P
    xr = x.reshape(B, C, gh, P, gw, P)
    xr = jnp.transpose(xr, (0, 2, 4, 1, 3, 5))     # (B, gh, gw, C, P, P)
    return xr.reshape(B, gh * gw, C * P * P), (gh, gw)


def patch_merging(x, hw, mp):
    # HF SwinPatchMerging: concat 2x2 neighbours then LN + Linear(4D -> 2D).
    # TODO(synk): the 2x2 strided gather + concat stays in plain JAX (one extra
    # HBM round trip per downsample); fusing it into the merge kernel's DMA is
    # a further optimization.
    B, L, D = x.shape
    H, W = hw
    xr = x.reshape(B, H, W, D)
    x0 = xr[:, 0::2, 0::2, :]
    x1 = xr[:, 1::2, 0::2, :]
    x2 = xr[:, 0::2, 1::2, :]
    x3 = xr[:, 1::2, 1::2, :]
    xc = jnp.concatenate([x0, x1, x2, x3], axis=-1)
    xc = xc.reshape(B * (H // 2) * (W // 2), 4 * D)
    y = patch_merge_proj(xc, mp['g'], mp['b'], mp['w'])
    return y.reshape(B, (H // 2) * (W // 2), 2 * D), (H // 2, W // 2)


def _relative_position_index(wh, ww):
    coords = np.stack(np.meshgrid(np.arange(wh), np.arange(ww), indexing="ij"))
    flat = coords.reshape(2, -1)
    rel = flat[:, :, None] - flat[:, None, :]
    rel = rel.transpose(1, 2, 0).astype(np.int64)
    rel[:, :, 0] += wh - 1
    rel[:, :, 1] += ww - 1
    rel[:, :, 0] *= 2 * ww - 1
    return rel.sum(-1)                             # (N, N)


def init_block(key, dim, num_heads, wh, ww, mlp_ratio=4):
    ks = jax.random.split(key, 7)
    std = 0.02
    hidden = dim * mlp_ratio
    N = wh * ww

    def lin(k, fi, fo):
        return std * jax.random.normal(k, (fi, fo), jnp.float32)

    table = std * jax.random.normal(
        ks[6], ((2 * wh - 1) * (2 * ww - 1), num_heads), jnp.float32)
    idx = _relative_position_index(wh, ww)
    rb = jnp.transpose(table[idx.reshape(-1)].reshape(N, N, num_heads), (2, 0, 1))

    wqkv = jnp.concatenate(
        [lin(ks[0], dim, dim), lin(ks[1], dim, dim), lin(ks[2], dim, dim)],
        axis=1).astype(jnp.bfloat16)

    return {
        'g1': jnp.ones((1, dim), jnp.float32), 'b1': jnp.zeros((1, dim), jnp.float32),
        'wqkv': wqkv, 'bqkv': jnp.zeros((1, 3 * dim), jnp.float32),
        'wo': lin(ks[3], dim, dim).astype(jnp.bfloat16),
        'bo': jnp.zeros((1, dim), jnp.float32),
        'rb': rb,
        'g2': jnp.ones((1, dim), jnp.float32), 'b2': jnp.zeros((1, dim), jnp.float32),
        'w1': lin(ks[4], dim, hidden).astype(jnp.bfloat16),
        'bm1': jnp.zeros((1, hidden), jnp.float32),
        'w2': lin(ks[5], hidden, dim).astype(jnp.bfloat16),
        'bm2': jnp.zeros((1, dim), jnp.float32),
    }


def init_model(key, in_chans, patch, embed_dim, depths, heads, grid_hw):
    kconv, kstages = jax.random.split(key)
    std = 0.02
    conv_w = std * jax.random.normal(kconv, (embed_dim, in_chans, patch, patch),
                                     jnp.float32)
    params = {
        'proj_w': conv_w.reshape(embed_dim, in_chans * patch * patch).T.astype(
            jnp.bfloat16),
        'proj_b': jnp.zeros((1, embed_dim), jnp.float32),
        'ln_g': jnp.ones((1, embed_dim), jnp.float32),
        'ln_b': jnp.zeros((1, embed_dim), jnp.float32),
        'stages': [],
    }
    gh, gw = grid_hw
    dim = embed_dim
    skeys = jax.random.split(kstages, len(depths))
    for si, depth in enumerate(depths):
        bkeys = jax.random.split(skeys[si], depth + 1)
        blocks = [init_block(bkeys[bi], dim, heads[si], gh, gw)
                  for bi in range(depth)]
        if si < len(depths) - 1:
            down = {
                'g': jnp.ones((1, 4 * dim), jnp.float32),
                'b': jnp.zeros((1, 4 * dim), jnp.float32),
                'w': (0.02 * jax.random.normal(
                    bkeys[-1], (4 * dim, 2 * dim), jnp.float32)
                      ).astype(jnp.bfloat16),
            }
            dim *= 2
            gh //= 2
            gw //= 2
        else:
            down = None
        params['stages'].append({'blocks': blocks, 'downsample': down})
    return params


def wrapper2d_pretrain_forward(x, params, *, patch_size, depths, heads):
    # output_raw=True, classification=False, train_embedder=False path.
    patches, (gh, gw) = patchify(x, patch_size)
    B, L, K = patches.shape
    emb = patch_embed(patches.reshape(B * L, K), params['proj_w'],
                      params['proj_b'], params['ln_g'], params['ln_b'])
    hidden = emb.reshape(B, L, -1)
    hw = (gh, gw)
    for si, stage in enumerate(params['stages']):
        for bi in range(depths[si]):
            bp = stage['blocks'][bi]
            hidden = swin_attention(hidden, bp, heads[si])
            hidden = swin_mlp(hidden, bp)
        if stage['downsample'] is not None:
            hidden, hw = patch_merging(hidden, hw, stage['downsample'])
    return hidden  # encoder last_hidden_state


if __name__ == "__main__":
    key = jax.random.PRNGKey(0)
    # Small, shape-consistent config (scaled-down swin-base analogue):
    B, C, H, W = 2, 4, 16, 16          # x: NCHW
    patch_size = 4
    embed_dim = 32
    depths = (1, 1)
    heads = (2, 4)

    kx, kp = jax.random.split(key)
    x = jax.random.normal(kx, (B, C, H, W), jnp.float32)
    params = init_model(kp, C, patch_size, embed_dim, depths, heads,
                        (H // patch_size, W // patch_size))

    fwd = jax.jit(functools.partial(wrapper2d_pretrain_forward,
                                    patch_size=patch_size, depths=depths,
                                    heads=heads))
    out = jax.block_until_ready(fwd(x, params))
    expected = (B, (H // patch_size // 2) * (W // patch_size // 2),
                embed_dim * 2)
    assert out.shape == expected, (out.shape, expected)
    assert jnp.all(jnp.isfinite(out))
    print("KERNEL_OK")
</pallas_src>

<mosaic_0001>
module attributes {stable_mosaic.version = 11 : i64} {
  func.func @_patch_embed_kernel(%arg0: i32, %arg1: memref<32x64xf32, #tpu.memory_space<vmem>>, %arg2: memref<64x32xbf16, #tpu.memory_space<vmem>>, %arg3: memref<1x32xf32, #tpu.memory_space<vmem>>, %arg4: memref<1x32xf32, #tpu.memory_space<vmem>>, %arg5: memref<1x32xf32, #tpu.memory_space<vmem>>, %arg6: memref<32x32xf32, #tpu.memory_space<vmem>>) attributes {dimension_semantics = [#tpu.dimension_semantics<parallel>], iteration_bounds = array<i64: 1>, scalar_prefetch = 0 : i64, scratch_operands = 0 : i64, tpu.core_type = #tpu.core_type<tc>, window_params = [{transform_indices = @transform_0, window_bounds = array<i64: 32, 64>}, {pipeline_mode = #tpu.pipeline_mode<synchronous>, transform_indices = @transform_1, window_bounds = array<i64: 64, 32>}, {pipeline_mode = #tpu.pipeline_mode<synchronous>, transform_indices = @transform_2, window_bounds = array<i64: 1, 32>}, {pipeline_mode = #tpu.pipeline_mode<synchronous>, transform_indices = @transform_3, window_bounds = array<i64: 1, 32>}, {pipeline_mode = #tpu.pipeline_mode<synchronous>, transform_indices = @transform_4, window_bounds = array<i64: 1, 32>}, {transform_indices = @transform_5, window_bounds = array<i64: 32, 32>}]} {
    %c0 = arith.constant 0 : index
    %c0_0 = arith.constant 0 : index
    %0 = vector.load %arg1[%c0, %c0_0] : memref<32x64xf32, #tpu.memory_space<vmem>>, vector<32x64xf32>
    %1 = arith.truncf %0 : vector<32x64xf32> to vector<32x64xbf16>
    %c0_1 = arith.constant 0 : index
    %c0_2 = arith.constant 0 : index
    %2 = vector.load %arg2[%c0_1, %c0_2] : memref<64x32xbf16, #tpu.memory_space<vmem>>, vector<64x32xbf16>
    %cst = arith.constant dense<0.000000e+00> : vector<32x32xf32>
    %3 = tpu.matmul %1, %2, %cst {dimension_numbers = #tpu.dot_dimension_numbers<[1], [0], [0], [1], [0, 0, 1, 1], [], []>} : vector<32x64xbf16>, vector<64x32xbf16>, vector<32x32xf32> -> vector<32x32xf32>
    %c0_3 = arith.constant 0 : index
    %c0_4 = arith.constant 0 : index
    %4 = vector.load %arg3[%c0_3, %c0_4] : memref<1x32xf32, #tpu.memory_space<vmem>>, vector<1x32xf32>
    %5 = vector.broadcast %4 : vector<1x32xf32> to vector<32x32xf32>
    %6 = arith.addf %3, %5 : vector<32x32xf32>
    %c0_5 = arith.constant 0 : index
    %c0_6 = arith.constant 0 : index
    %7 = vector.load %arg4[%c0_5, %c0_6] : memref<1x32xf32, #tpu.memory_space<vmem>>, vector<1x32xf32>
    %c0_7 = arith.constant 0 : index
    %c0_8 = arith.constant 0 : index
    %8 = vector.load %arg5[%c0_7, %c0_8] : memref<1x32xf32, #tpu.memory_space<vmem>>, vector<1x32xf32>
    %cst_9 = arith.constant dense<0.000000e+00> : vector<32xf32>
    %9 = vector.multi_reduction <add>, %6, %cst_9 [1] : vector<32x32xf32> to vector<32xf32>
    %10 = vector.shape_cast %9 : vector<32xf32> to vector<32x1xf32>
    %cst_10 = arith.constant 3.200000e+01 : f32
    %11 = vector.broadcast %cst_10 : f32 to vector<32x1xf32>
    %12 = arith.divf %10, %11 : vector<32x1xf32>
    %13 = vector.broadcast %12 : vector<32x1xf32> to vector<32x32xf32>
    %14 = arith.subf %6, %13 : vector<32x32xf32>
    %15 = arith.mulf %14, %14 : vector<32x32xf32>
    %cst_11 = arith.constant dense<0.000000e+00> : vector<32xf32>
    %16 = vector.multi_reduction <add>, %15, %cst_11 [1] : vector<32x32xf32> to vector<32xf32>
    %17 = vector.shape_cast %16 : vector<32xf32> to vector<32x1xf32>
    %cst_12 = arith.constant 3.200000e+01 : f32
    %18 = vector.broadcast %cst_12 : f32 to vector<32x1xf32>
    %19 = arith.divf %17, %18 : vector<32x1xf32>
    %20 = vector.broadcast %12 : vector<32x1xf32> to vector<32x32xf32>
    %21 = arith.subf %6, %20 : vector<32x32xf32>
    %cst_13 = arith.constant 9.99999974E-6 : f32
    %22 = vector.broadcast %cst_13 : f32 to vector<32x1xf32>
    %23 = arith.addf %19, %22 : vector<32x1xf32>
    %24 = math.rsqrt %23 : vector<32x1xf32>
    %25 = vector.broadcast %24 : vector<32x1xf32> to vector<32x32xf32>
    %26 = arith.mulf %21, %25 : vector<32x32xf32>
    %27 = vector.broadcast %7 : vector<1x32xf32> to vector<32x32xf32>
    %28 = arith.mulf %26, %27 : vector<32x32xf32>
    %29 = vector.broadcast %8 : vector<1x32xf32> to vector<32x32xf32>
    %30 = arith.addf %28, %29 : vector<32x32xf32>
    %c0_14 = arith.constant 0 : index
    %c0_15 = arith.constant 0 : index
    %31 = vector.load %arg6[%c0_14, %c0_15] : memref<32x32xf32, #tpu.memory_space<vmem>>, vector<32x32xf32>
    tpu.vector_store %arg6[%c0_14, %c0_15], %30 {strides = array<i32>} : memref<32x32xf32, #tpu.memory_space<vmem>>, vector<32x32xf32>,
    return
  }
  func.func @transform_0(%arg0: i32) -> (i32, i32) {
    %c0_i32 = arith.constant 0 : i32
    %c0_i32_0 = arith.constant 0 : i32
    return %arg0, %c0_i32 : i32, i32
  }
  func.func @transform_1(%arg0: i32) -> (i32, i32) {
    %c0_i32 = arith.constant 0 : i32
    %c0_i32_0 = arith.constant 0 : i32
    %c0_i32_1 = arith.constant 0 : i32
    return %c0_i32, %c0_i32_0 : i32, i32
  }
  func.func @transform_2(%arg0: i32) -> (i32, i32) {
    %c0_i32 = arith.constant 0 : i32
    %c0_i32_0 = arith.constant 0 : i32
    %c0_i32_1 = arith.constant 0 : i32
    return %c0_i32, %c0_i32_0 : i32, i32
  }
  func.func @transform_3(%arg0: i32) -> (i32, i32) {
    %c0_i32 = arith.constant 0 : i32
    %c0_i32_0 = arith.constant 0 : i32
    %c0_i32_1 = arith.constant 0 : i32
    return %c0_i32, %c0_i32_0 : i32, i32
  }
  func.func @transform_4(%arg0: i32) -> (i32, i32) {
    %c0_i32 = arith.constant 0 : i32
    %c0_i32_0 = arith.constant 0 : i32
    %c0_i32_1 = arith.constant 0 : i32
    return %c0_i32, %c0_i32_0 : i32, i32
  }
  func.func @transform_5(%arg0: i32) -> (i32, i32) {
    %c0_i32 = arith.constant 0 : i32
    %c0_i32_0 = arith.constant 0 : i32
    return %arg0, %c0_i32 : i32, i32
  }
}

module attributes {stable_mosaic.version = 11 : i64} {
  func.func @_attn_kernel(%arg0: i32, %arg1: memref<1x16x32xf32, #tpu.memory_space<vmem>>, %arg2: memref<1x32xf32, #tpu.memory_space<vmem>>, %arg3: memref<1x32xf32, #tpu.memory_space<vmem>>, %arg4: memref<32x96xbf16, #tpu.memory_space<vmem>>, %arg5: memref<1x96xf32, #tpu.memory_space<vmem>>, %arg6: memref<32x32xbf16, #tpu.memory_space<vmem>>, %arg7: memref<1x32xf32, #tpu.memory_space<vmem>>, %arg8: memref<2x16x16xf32, #tpu.memory_space<vmem>>, %arg9: memref<1x16x32xf32, #tpu.memory_space<vmem>>, %arg10: memref<16x32xf32, #tpu.memory_space<vmem>>) attributes {dimension_semantics = [#tpu.dimension_semantics<parallel>], iteration_bounds = array<i64: 2>, scalar_prefetch = 0 : i64, scratch_operands = 1 : i64, tpu.core_type = #tpu.core_type<tc>, window_params = [{transform_indices = @transform_0, window_bounds = array<i64: 1, 16, 32>}, {pipeline_mode = #tpu.pipeline_mode<synchronous>, transform_indices = @transform_1, window_bounds = array<i64: 1, 32>}, {pipeline_mode = #tpu.pipeline_mode<synchronous>, transform_indices = @transform_2, window_bounds = array<i64: 1, 32>}, {pipeline_mode = #tpu.pipeline_mode<synchronous>, transform_indices = @transform_3, window_bounds = array<i64: 32, 96>}, {pipeline_mode = #tpu.pipeline_mode<synchronous>, transform_indices = @transform_4, window_bounds = array<i64: 1, 96>}, {pipeline_mode = #tpu.pipeline_mode<synchronous>, transform_indices = @transform_5, window_bounds = array<i64: 32, 32>}, {pipeline_mode = #tpu.pipeline_mode<synchronous>, transform_indices = @transform_6, window_bounds = array<i64: 1, 32>}, {pipeline_mode = #tpu.pipeline_mode<synchronous>, transform_indices = @transform_7, window_bounds = array<i64: 2, 16, 16>}, {transform_indices = @transform_8, window_bounds = array<i64: 1, 16, 32>}]} {
    %c0 = arith.constant 0 : index
    %c0_0 = arith.constant 0 : index
    %c0_1 = arith.constant 0 : index
    %0 = vector.load %arg1[%c0, %c0_0, %c0_1] : memref<1x16x32xf32, #tpu.memory_space<vmem>>, vector<1x16x32xf32>
    %1 = vector.shape_cast %0 : vector<1x16x32xf32> to vector<16x32xf32>
    %c0_2 = arith.constant 0 : index
    %c0_3 = arith.constant 0 : index
    %2 = vector.load %arg2[%c0_2, %c0_3] : memref<1x32xf32, #tpu.memory_space<vmem>>, vector<1x32xf32>
    %c0_4 = arith.constant 0 : index
    %c0_5 = arith.constant 0 : index
    %3 = vector.load %arg3[%c0_4, %c0_5] : memref<1x32xf32, #tpu.memory_space<vmem>>, vector<1x32xf32>
    %cst = arith.constant dense<0.000000e+00> : vector<16xf32>
    %4 = vector.multi_reduction <add>, %1, %cst [1] : vector<16x32xf32> to vector<16xf32>
    %5 = vector.shape_cast %4 : vector<16xf32> to vector<16x1xf32>
    %cst_6 = arith.constant 3.200000e+01 : f32
    %6 = vector.broadcast %cst_6 : f32 to vector<16x1xf32>
    %7 = arith.divf %5, %6 : vector<16x1xf32>
    %8 = vector.broadcast %7 : vector<16x1xf32> to vector<16x32xf32>
    %9 = arith.subf %1, %8 : vector<16x32xf32>
    %10 = arith.mulf %9, %9 : vector<16x32xf32>
    %cst_7 = arith.constant dense<0.000000e+00> : vector<16xf32>
    %11 = vector.multi_reduction <add>, %10, %cst_7 [1] : vector<16x32xf32> to vector<16xf32>
    %12 = vector.shape_cast %11 : vector<16xf32> to vector<16x1xf32>
    %cst_8 = arith.constant 3.200000e+01 : f32
    %13 = vector.broadcast %cst_8 : f32 to vector<16x1xf32>
    %14 = arith.divf %12, %13 : vector<16x1xf32>
    %15 = vector.broadcast %7 : vector<16x1xf32> to vector<16x32xf32>
    %16 = arith.subf %1, %15 : vector<16x32xf32>
    %cst_9 = arith.constant 9.99999974E-6 : f32
    %17 = vector.broadcast %cst_9 : f32 to vector<16x1xf32>
    %18 = arith.addf %14, %17 : vector<16x1xf32>
    %19 = math.rsqrt %18 : vector<16x1xf32>
    %20 = vector.broadcast %19 : vector<16x1xf32> to vector<16x32xf32>
    %21 = arith.mulf %16, %20 : vector<16x32xf32>
    %22 = vector.broadcast %2 : vector<1x32xf32> to vector<16x32xf32>
    %23 = arith.mulf %21, %22 : vector<16x32xf32>
    %24 = vector.broadcast %3 : vector<1x32xf32> to vector<16x32xf32>
    %25 = arith.addf %23, %24 : vector<16x32xf32>
    %26 = arith.truncf %25 : vector<16x32xf32> to vector<16x32xbf16>
    %c0_10 = arith.constant 0 : index
    %c0_11 = arith.constant 0 : index
    %27 = vector.load %arg4[%c0_10, %c0_11] : memref<32x96xbf16, #tpu.memory_space<vmem>>, vector<32x96xbf16>
    %cst_12 = arith.constant dense<0.000000e+00> : vector<16x96xf32>
    %28 = tpu.matmul %26, %27, %cst_12 {dimension_numbers = #tpu.dot_dimension_numbers<[1], [0], [0], [1], [0, 0, 1, 1], [], []>} : vector<16x32xbf16>, vector<32x96xbf16>, vector<16x96xf32> -> vector<16x96xf32>
    %c0_13 = arith.constant 0 : index
    %c0_14 = arith.constant 0 : index
    %29 = vector.load %arg5[%c0_13, %c0_14] : memref<1x96xf32, #tpu.memory_space<vmem>>, vector<1x96xf32>
    %30 = vector.broadcast %29 : vector<1x96xf32> to vector<16x96xf32>
    %31 = arith.addf %28, %30 : vector<16x96xf32>
    %32 = vector.extract_strided_slice %31 {offsets = [0, 0], sizes = [16, 32], strides = [1, 1]} : vector<16x96xf32> to vector<16x32xf32>
    %cst_15 = arith.constant 2.500000e-01 : f32
    %33 = vector.broadcast %cst_15 : f32 to vector<16x32xf32>
    %34 = arith.mulf %32, %33 : vector<16x32xf32>
    %35 = vector.extract_strided_slice %31 {offsets = [0, 32], sizes = [16, 32], strides = [1, 1]} : vector<16x96xf32> to vector<16x32xf32>
    %36 = vector.extract_strided_slice %31 {offsets = [0, 64], sizes = [16, 32], strides = [1, 1]} : vector<16x96xf32> to vector<16x32xf32>
    %37 = vector.extract_strided_slice %34 {offsets = [0, 0], sizes = [16, 16], strides = [1, 1]} : vector<16x32xf32> to vector<16x16xf32>
    %38 = arith.truncf %37 : vector<16x16xf32> to vector<16x16xbf16>
    %39 = vector.extract_strided_slice %35 {offsets = [0, 0], sizes = [16, 16], strides = [1, 1]} : vector<16x32xf32> to vector<16x16xf32>
    %40 = arith.truncf %39 : vector<16x16xf32> to vector<16x16xbf16>
    %41 = vector.extract_strided_slice %36 {offsets = [0, 0], sizes = [16, 16], strides = [1, 1]} : vector<16x32xf32> to vector<16x16xf32>
    %42 = arith.truncf %41 : vector<16x16xf32> to vector<16x16xbf16>
    %cst_16 = arith.constant dense<0.000000e+00> : vector<16x16xf32>
    %43 = tpu.matmul %38, %40, %cst_16 {dimension_numbers = #tpu.dot_dimension_numbers<[1], [1], [0], [0], [0, 0, 1, 0], [], []>} : vector<16x16xbf16>, vector<16x16xbf16>, vector<16x16xf32> -> vector<16x16xf32>
    %c0_17 = arith.constant 0 : index
    %c0_18 = arith.constant 0 : index
    %c0_19 = arith.constant 0 : index
    %44 = vector.load %arg8[%c0_17, %c0_18, %c0_19] : memref<2x16x16xf32, #tpu.memory_space<vmem>>, vector<1x16x16xf32>
    %45 = vector.shape_cast %44 : vector<1x16x16xf32> to vector<16x16xf32>
    %46 = arith.addf %43, %45 : vector<16x16xf32>
    %cst_20 = arith.constant dense<0xFF800000> : vector<16xf32>
    %47 = vector.multi_reduction <maximumf>, %46, %cst_20 [1] : vector<16x16xf32> to vector<16xf32>
    %48 = vector.shape_cast %47 : vector<16xf32> to vector<16x1xf32>
    %49 = vector.broadcast %48 : vector<16x1xf32> to vector<16x16xf32>
    %50 = arith.subf %46, %49 : vector<16x16xf32>
    %51 = math.exp %50 : vector<16x16xf32>
    %cst_21 = arith.constant dense<0.000000e+00> : vector<16xf32>
    %52 = vector.multi_reduction <add>, %51, %cst_21 [1] : vector<16x16xf32> to vector<16xf32>
    %53 = vector.shape_cast %52 : vector<16xf32> to vector<16x1xf32>
    %54 = tpu.reciprocal %53 {approx = true} : vector<16x1xf32> -> vector<16x1xf32>
    %55 = vector.broadcast %54 : vector<16x1xf32> to vector<16x16xf32>
    %56 = arith.mulf %51, %55 : vector<16x16xf32>
    %57 = arith.truncf %56 : vector<16x16xf32> to vector<16x16xbf16>
    %cst_22 = arith.constant dense<0.000000e+00> : vector<16x16xf32>
    %58 = tpu.matmul %57, %42, %cst_22 {dimension_numbers = #tpu.dot_dimension_numbers<[1], [0], [0], [1], [0, 0, 1, 1], [], []>} : vector<16x16xbf16>, vector<16x16xbf16>, vector<16x16xf32> -> vector<16x16xf32>
    %c0_23 = arith.constant 0 : index
    %c0_24 = arith.constant 0 : index
    %59 = vector.load %arg10[%c0_23, %c0_24] : memref<16x32xf32, #tpu.memory_space<vmem>>, vector<16x16xf32>
    tpu.vector_store %arg10[%c0_23, %c0_24], %58 {strides = array<i32>} : memref<16x32xf32, #tpu.memory_space<vmem>>, vector<16x16xf32>,
    %60 = vector.extract_strided_slice %34 {offsets = [0, 16], sizes = [16, 16], strides = [1, 1]} : vector<16x32xf32> to vector<16x16xf32>
    %61 = arith.truncf %60 : vector<16x16xf32> to vector<16x16xbf16>
    %62 = vector.extract_strided_slice %35 {offsets = [0, 16], sizes = [16, 16], strides = [1, 1]} : vector<16x32xf32> to vector<16x16xf32>
    %63 = arith.truncf %62 : vector<16x16xf32> to vector<16x16xbf16>
    %64 = vector.extract_strided_slice %36 {offsets = [0, 16], sizes = [16, 16], strides = [1, 1]} : vector<16x32xf32> to vector<16x16xf32>
    %65 = arith.truncf %64 : vector<16x16xf32> to vector<16x16xbf16>
    %cst_25 = arith.constant dense<0.000000e+00> : vector<16x16xf32>
    %66 = tpu.matmul %61, %63, %cst_25 {dimension_numbers = #tpu.dot_dimension_numbers<[1], [1], [0], [0], [0, 0, 1, 0], [], []>} : vector<16x16xbf16>, vector<16x16xbf16>, vector<16x16xf32> -> vector<16x16xf32>
    %c1 = arith.constant 1 : index
    %c0_26 = arith.constant 0 : index
    %c0_27 = arith.constant 0 : index
    %67 = vector.load %arg8[%c1, %c0_26, %c0_27] : memref<2x16x16xf32, #tpu.memory_space<vmem>>, vector<1x16x16xf32>
    %68 = vector.shape_cast %67 : vector<1x16x16xf32> to vector<16x16xf32>
    %69 = arith.addf %66, %68 : vector<16x16xf32>
    %cst_28 = arith.constant dense<0xFF800000> : vector<16xf32>
    %70 = vector.multi_reduction <maximumf>, %69, %cst_28 [1] : vector<16x16xf32> to vector<16xf32>
    %71 = vector.shape_cast %70 : vector<16xf32> to vector<16x1xf32>
    %72 = vector.broadcast %71 : vector<16x1xf32> to vector<16x16xf32>
    %73 = arith.subf %69, %72 : vector<16x16xf32>
    %74 = math.exp %73 : vector<16x16xf32>
    %cst_29 = arith.constant dense<0.000000e+00> : vector<16xf32>
    %75 = vector.multi_reduction <add>, %74, %cst_29 [1] : vector<16x16xf32> to vector<16xf32>
    %76 = vector.shape_cast %75 : vector<16xf32> to vector<16x1xf32>
    %77 = tpu.reciprocal %76 {approx = true} : vector<16x1xf32> -> vector<16x1xf32>
    %78 = vector.broadcast %77 : vector<16x1xf32> to vector<16x16xf32>
    %79 = arith.mulf %74, %78 : vector<16x16xf32>
    %80 = arith.truncf %79 : vector<16x16xf32> to vector<16x16xbf16>
    %cst_30 = arith.constant dense<0.000000e+00> : vector<16x16xf32>
    %81 = tpu.matmul %80, %65, %cst_30 {dimension_numbers = #tpu.dot_dimension_numbers<[1], [0], [0], [1], [0, 0, 1, 1], [], []>} : vector<16x16xbf16>, vector<16x16xbf16>, vector<16x16xf32> -> vector<16x16xf32>
    %c0_31 = arith.constant 0 : index
    %c16 = arith.constant 16 : index
    %82 = vector.load %arg10[%c0_31, %c16] : memref<16x32xf32, #tpu.memory_space<vmem>>, vector<16x16xf32>
    tpu.vector_store %arg10[%c0_31, %c16], %81 {strides = array<i32>} : memref<16x32xf32, #tpu.memory_space<vmem>>, vector<16x16xf32>,
    %c0_32 = arith.constant 0 : index
    %c0_33 = arith.constant 0 : index
    %83 = vector.load %arg10[%c0_32, %c0_33] : memref<16x32xf32, #tpu.memory_space<vmem>>, vector<16x32xf32>
    %84 = arith.truncf %83 : vector<16x32xf32> to vector<16x32xbf16>
    %c0_34 = arith.constant 0 : index
    %c0_35 = arith.constant 0 : index
    %85 = vector.load %arg6[%c0_34, %c0_35] : memref<32x32xbf16, #tpu.memory_space<vmem>>, vector<32x32xbf16>
    %cst_36 = arith.constant dense<0.000000e+00> : vector<16x32xf32>
    %86 = tpu.matmul %84, %85, %cst_36 {dimension_numbers = #tpu.dot_dimension_numbers<[1], [0], [0], [1], [0, 0, 1, 1], [], []>} : vector<16x32xbf16>, vector<32x32xbf16>, vector<16x32xf32> -> vector<16x32xf32>
    %c0_37 = arith.constant 0 : index
    %c0_38 = arith.constant 0 : index
    %87 = vector.load %arg7[%c0_37, %c0_38] : memref<1x32xf32, #tpu.memory_space<vmem>>, vector<1x32xf32>
    %88 = vector.broadcast %87 : vector<1x32xf32> to vector<16x32xf32>
    %89 = arith.addf %86, %88 : vector<16x32xf32>
    %90 = arith.addf %1, %89 : vector<16x32xf32>
    %c0_39 = arith.constant 0 : index
    %c0_40 = arith.constant 0 : index
    %c0_41 = arith.constant 0 : index
    %91 = vector.load %arg9[%c0_39, %c0_40, %c0_41] : memref<1x16x32xf32, #tpu.memory_space<vmem>>, vector<1x16x32xf32>
    %92 = vector.shape_cast %91 : vector<1x16x32xf32> to vector<16x32xf32>
    %93 = vector.shape_cast %90 : vector<16x32xf32> to vector<1x16x32xf32>
    tpu.vector_store %arg9[%c0_39, %c0_40, %c0_41], %93 {strides = array<i32>} : memref<1x16x32xf32, #tpu.memory_space<vmem>>, vector<1x16x32xf32>,
    return
  }
  func.func @transform_0(%arg0: i32) -> (i32, i32, i32) {
    %c0_i32 = arith.constant 0 : i32
    %c0_i32_0 = arith.constant 0 : i32
    %c0_i32_1 = arith.constant 0 : i32
    return %arg0, %c0_i32, %c0_i32_0 : i32, i32, i32
  }
  func.func @transform_1(%arg0: i32) -> (i32, i32) {
    %c0_i32 = arith.constant 0 : i32
    %c0_i32_0 = arith.constant 0 : i32
    %c0_i32_1 = arith.constant 0 : i32
    return %c0_i32, %c0_i32_0 : i32, i32
  }
  func.func @transform_2(%arg0: i32) -> (i32, i32) {
    %c0_i32 = arith.constant 0 : i32
    %c0_i32_0 = arith.constant 0 : i32
    %c0_i32_1 = arith.constant 0 : i32
    return %c0_i32, %c0_i32_0 : i32, i32
  }
  func.func @transform_3(%arg0: i32) -> (i32, i32) {
    %c0_i32 = arith.constant 0 : i32
    %c0_i32_0 = arith.constant 0 : i32
    %c0_i32_1 = arith.constant 0 : i32
    return %c0_i32, %c0_i32_0 : i32, i32
  }
  func.func @transform_4(%arg0: i32) -> (i32, i32) {
    %c0_i32 = arith.constant 0 : i32
    %c0_i32_0 = arith.constant 0 : i32
    %c0_i32_1 = arith.constant 0 : i32
    return %c0_i32, %c0_i32_0 : i32, i32
  }
  func.func @transform_5(%arg0: i32) -> (i32, i32) {
    %c0_i32 = arith.constant 0 : i32
    %c0_i32_0 = arith.constant 0 : i32
    %c0_i32_1 = arith.constant 0 : i32
    return %c0_i32, %c0_i32_0 : i32, i32
  }
  func.func @transform_6(%arg0: i32) -> (i32, i32) {
    %c0_i32 = arith.constant 0 : i32
    %c0_i32_0 = arith.constant 0 : i32
    %c0_i32_1 = arith.constant 0 : i32
    return %c0_i32, %c0_i32_0 : i32, i32
  }
  func.func @transform_7(%arg0: i32) -> (i32, i32, i32) {
    %c0_i32 = arith.constant 0 : i32
    %c0_i32_0 = arith.constant 0 : i32
    %c0_i32_1 = arith.constant 0 : i32
    %c0_i32_2 = arith.constant 0 : i32
    return %c0_i32, %c0_i32_0, %c0_i32_1 : i32, i32, i32
  }
  func.func @transform_8(%arg0: i32) -> (i32, i32, i32) {
    %c0_i32 = arith.constant 0 : i32
    %c0_i32_0 = arith.constant 0 : i32
    %c0_i32_1 = arith.constant 0 : i32
    return %arg0, %c0_i32, %c0_i32_0 : i32, i32, i32
  }
}

module attributes {stable_mosaic.version = 11 : i64} {
  func.func @_mlp_kernel(%arg0: i32, %arg1: memref<32x32xf32, #tpu.memory_space<vmem>>, %arg2: memref<1x32xf32, #tpu.memory_space<vmem>>, %arg3: memref<1x32xf32, #tpu.memory_space<vmem>>, %arg4: memref<32x128xbf16, #tpu.memory_space<vmem>>, %arg5: memref<1x128xf32, #tpu.memory_space<vmem>>, %arg6: memref<128x32xbf16, #tpu.memory_space<vmem>>, %arg7: memref<1x32xf32, #tpu.memory_space<vmem>>, %arg8: memref<32x32xf32, #tpu.memory_space<vmem>>) attributes {dimension_semantics = [#tpu.dimension_semantics<parallel>], iteration_bounds = array<i64: 1>, scalar_prefetch = 0 : i64, scratch_operands = 0 : i64, tpu.core_type = #tpu.core_type<tc>, window_params = [{transform_indices = @transform_0, window_bounds = array<i64: 32, 32>}, {pipeline_mode = #tpu.pipeline_mode<synchronous>, transform_indices = @transform_1, window_bounds = array<i64: 1, 32>}, {pipeline_mode = #tpu.pipeline_mode<synchronous>, transform_indices = @transform_2, window_bounds = array<i64: 1, 32>}, {pipeline_mode = #tpu.pipeline_mode<synchronous>, transform_indices = @transform_3, window_bounds = array<i64: 32, 128>}, {pipeline_mode = #tpu.pipeline_mode<synchronous>, transform_indices = @transform_4, window_bounds = array<i64: 1, 128>}, {pipeline_mode = #tpu.pipeline_mode<synchronous>, transform_indices = @transform_5, window_bounds = array<i64: 128, 32>}, {pipeline_mode = #tpu.pipeline_mode<synchronous>, transform_indices = @transform_6, window_bounds = array<i64: 1, 32>}, {transform_indices = @transform_7, window_bounds = array<i64: 32, 32>}]} {
    %c0 = arith.constant 0 : index
    %c0_0 = arith.constant 0 : index
    %0 = vector.load %arg1[%c0, %c0_0] : memref<32x32xf32, #tpu.memory_space<vmem>>, vector<32x32xf32>
    %c0_1 = arith.constant 0 : index
    %c0_2 = arith.constant 0 : index
    %1 = vector.load %arg2[%c0_1, %c0_2] : memref<1x32xf32, #tpu.memory_space<vmem>>, vector<1x32xf32>
    %c0_3 = arith.constant 0 : index
    %c0_4 = arith.constant 0 : index
    %2 = vector.load %arg3[%c0_3, %c0_4] : memref<1x32xf32, #tpu.memory_space<vmem>>, vector<1x32xf32>
    %cst = arith.constant dense<0.000000e+00> : vector<32xf32>
    %3 = vector.multi_reduction <add>, %0, %cst [1] : vector<32x32xf32> to vector<32xf32>
    %4 = vector.shape_cast %3 : vector<32xf32> to vector<32x1xf32>
    %cst_5 = arith.constant 3.200000e+01 : f32
    %5 = vector.broadcast %cst_5 : f32 to vector<32x1xf32>
    %6 = arith.divf %4, %5 : vector<32x1xf32>
    %7 = vector.broadcast %6 : vector<32x1xf32> to vector<32x32xf32>
    %8 = arith.subf %0, %7 : vector<32x32xf32>
    %9 = arith.mulf %8, %8 : vector<32x32xf32>
    %cst_6 = arith.constant dense<0.000000e+00> : vector<32xf32>
    %10 = vector.multi_reduction <add>, %9, %cst_6 [1] : vector<32x32xf32> to vector<32xf32>
    %11 = vector.shape_cast %10 : vector<32xf32> to vector<32x1xf32>
    %cst_7 = arith.constant 3.200000e+01 : f32
    %12 = vector.broadcast %cst_7 : f32 to vector<32x1xf32>
    %13 = arith.divf %11, %12 : vector<32x1xf32>
    %14 = vector.broadcast %6 : vector<32x1xf32> to vector<32x32xf32>
    %15 = arith.subf %0, %14 : vector<32x32xf32>
    %cst_8 = arith.constant 9.99999974E-6 : f32
    %16 = vector.broadcast %cst_8 : f32 to vector<32x1xf32>
    %17 = arith.addf %13, %16 : vector<32x1xf32>
    %18 = math.rsqrt %17 : vector<32x1xf32>
    %19 = vector.broadcast %18 : vector<32x1xf32> to vector<32x32xf32>
    %20 = arith.mulf %15, %19 : vector<32x32xf32>
    %21 = vector.broadcast %1 : vector<1x32xf32> to vector<32x32xf32>
    %22 = arith.mulf %20, %21 : vector<32x32xf32>
    %23 = vector.broadcast %2 : vector<1x32xf32> to vector<32x32xf32>
    %24 = arith.addf %22, %23 : vector<32x32xf32>
    %25 = arith.truncf %24 : vector<32x32xf32> to vector<32x32xbf16>
    %c0_9 = arith.constant 0 : index
    %c0_10 = arith.constant 0 : index
    %26 = vector.load %arg4[%c0_9, %c0_10] : memref<32x128xbf16, #tpu.memory_space<vmem>>, vector<32x128xbf16>
    %cst_11 = arith.constant dense<0.000000e+00> : vector<32x128xf32>
    %27 = tpu.matmul %25, %26, %cst_11 {dimension_numbers = #tpu.dot_dimension_numbers<[1], [0], [0], [1], [0, 0, 1, 1], [], []>} : vector<32x32xbf16>, vector<32x128xbf16>, vector<32x128xf32> -> vector<32x128xf32>
    %c0_12 = arith.constant 0 : index
    %c0_13 = arith.constant 0 : index
    %28 = vector.load %arg5[%c0_12, %c0_13] : memref<1x128xf32, #tpu.memory_space<vmem>>, vector<1x128xf32>
    %29 = vector.broadcast %28 : vector<1x128xf32> to vector<32x128xf32>
    %30 = arith.addf %27, %29 : vector<32x128xf32>
    %31 = arith.mulf %30, %30 : vector<32x128xf32>
    %32 = arith.mulf %30, %31 : vector<32x128xf32>
    %cst_14 = arith.constant 4.471500e-02 : f32
    %33 = vector.broadcast %cst_14 : f32 to vector<32x128xf32>
    %34 = arith.mulf %33, %32 : vector<32x128xf32>
    %35 = arith.addf %30, %34 : vector<32x128xf32>
    %cst_15 = arith.constant 0.797884583 : f32
    %36 = vector.broadcast %cst_15 : f32 to vector<32x128xf32>
    %37 = arith.mulf %36, %35 : vector<32x128xf32>
    %38 = math.tanh %37 : vector<32x128xf32>
    %cst_16 = arith.constant 1.000000e+00 : f32
    %39 = vector.broadcast %cst_16 : f32 to vector<32x128xf32>
    %40 = arith.addf %39, %38 : vector<32x128xf32>
    %cst_17 = arith.constant 5.000000e-01 : f32
    %41 = vector.broadcast %cst_17 : f32 to vector<32x128xf32>
    %42 = arith.mulf %41, %40 : vector<32x128xf32>
    %43 = arith.mulf %30, %42 : vector<32x128xf32>
    %44 = arith.truncf %43 : vector<32x128xf32> to vector<32x128xbf16>
    %c0_18 = arith.constant 0 : index
    %c0_19 = arith.constant 0 : index
    %45 = vector.load %arg6[%c0_18, %c0_19] : memref<128x32xbf16, #tpu.memory_space<vmem>>, vector<128x32xbf16>
    %cst_20 = arith.constant dense<0.000000e+00> : vector<32x32xf32>
    %46 = tpu.matmul %44, %45, %cst_20 {dimension_numbers = #tpu.dot_dimension_numbers<[1], [0], [0], [1], [0, 0, 1, 1], [], []>} : vector<32x128xbf16>, vector<128x32xbf16>, vector<32x32xf32> -> vector<32x32xf32>
    %c0_21 = arith.constant 0 : index
    %c0_22 = arith.constant 0 : index
    %47 = vector.load %arg7[%c0_21, %c0_22] : memref<1x32xf32, #tpu.memory_space<vmem>>, vector<1x32xf32>
    %48 = vector.broadcast %47 : vector<1x32xf32> to vector<32x32xf32>
    %49 = arith.addf %46, %48 : vector<32x32xf32>
    %50 = arith.addf %0, %49 : vector<32x32xf32>
    %c0_23 = arith.constant 0 : index
    %c0_24 = arith.constant 0 : index
    %51 = vector.load %arg8[%c0_23, %c0_24] : memref<32x32xf32, #tpu.memory_space<vmem>>, vector<32x32xf32>
    tpu.vector_store %arg8[%c0_23, %c0_24], %50 {strides = array<i32>} : memref<32x32xf32, #tpu.memory_space<vmem>>, vector<32x32xf32>,
    return
  }
  func.func @transform_0(%arg0: i32) -> (i32, i32) {
    %c0_i32 = arith.constant 0 : i32
    %c0_i32_0 = arith.constant 0 : i32
    return %arg0, %c0_i32 : i32, i32
  }
  func.func @transform_1(%arg0: i32) -> (i32, i32) {
    %c0_i32 = arith.constant 0 : i32
    %c0_i32_0 = arith.constant 0 : i32
    %c0_i32_1 = arith.constant 0 : i32
    return %c0_i32, %c0_i32_0 : i32, i32
  }
  func.func @transform_2(%arg0: i32) -> (i32, i32) {
    %c0_i32 = arith.constant 0 : i32
    %c0_i32_0 = arith.constant 0 : i32
    %c0_i32_1 = arith.constant 0 : i32
    return %c0_i32, %c0_i32_0 : i32, i32
  }
  func.func @transform_3(%arg0: i32) -> (i32, i32) {
    %c0_i32 = arith.constant 0 : i32
    %c0_i32_0 = arith.constant 0 : i32
    %c0_i32_1 = arith.constant 0 : i32
    return %c0_i32, %c0_i32_0 : i32, i32
  }
  func.func @transform_4(%arg0: i32) -> (i32, i32) {
    %c0_i32 = arith.constant 0 : i32
    %c0_i32_0 = arith.constant 0 : i32
    %c0_i32_1 = arith.constant 0 : i32
    return %c0_i32, %c0_i32_0 : i32, i32
  }
  func.func @transform_5(%arg0: i32) -> (i32, i32) {
    %c0_i32 = arith.constant 0 : i32
    %c0_i32_0 = arith.constant 0 : i32
    %c0_i32_1 = arith.constant 0 : i32
    return %c0_i32, %c0_i32_0 : i32, i32
  }
  func.func @transform_6(%arg0: i32) -> (i32, i32) {
    %c0_i32 = arith.constant 0 : i32
    %c0_i32_0 = arith.constant 0 : i32
    %c0_i32_1 = arith.constant 0 : i32
    return %c0_i32, %c0_i32_0 : i32, i32
  }
  func.func @transform_7(%arg0: i32) -> (i32, i32) {
    %c0_i32 = arith.constant 0 : i32
    %c0_i32_0 = arith.constant 0 : i32
    return %arg0, %c0_i32 : i32, i32
  }
}

module attributes {stable_mosaic.version = 11 : i64} {
  func.func @_merge_kernel(%arg0: i32, %arg1: memref<8x128xf32, #tpu.memory_space<vmem>>, %arg2: memref<1x128xf32, #tpu.memory_space<vmem>>, %arg3: memref<1x128xf32, #tpu.memory_space<vmem>>, %arg4: memref<128x64xbf16, #tpu.memory_space<vmem>>, %arg5: memref<8x64xf32, #tpu.memory_space<vmem>>) attributes {dimension_semantics = [#tpu.dimension_semantics<parallel>], iteration_bounds = array<i64: 1>, scalar_prefetch = 0 : i64, scratch_operands = 0 : i64, tpu.core_type = #tpu.core_type<tc>, window_params = [{transform_indices = @transform_0, window_bounds = array<i64: 8, 128>}, {pipeline_mode = #tpu.pipeline_mode<synchronous>, transform_indices = @transform_1, window_bounds = array<i64: 1, 128>}, {pipeline_mode = #tpu.pipeline_mode<synchronous>, transform_indices = @transform_2, window_bounds = array<i64: 1, 128>}, {pipeline_mode = #tpu.pipeline_mode<synchronous>, transform_indices = @transform_3, window_bounds = array<i64: 128, 64>}, {transform_indices = @transform_4, window_bounds = array<i64: 8, 64>}]} {
    %c0 = arith.constant 0 : index
    %c0_0 = arith.constant 0 : index
    %0 = vector.load %arg1[%c0, %c0_0] : memref<8x128xf32, #tpu.memory_space<vmem>>, vector<8x128xf32>
    %c0_1 = arith.constant 0 : index
    %c0_2 = arith.constant 0 : index
    %1 = vector.load %arg2[%c0_1, %c0_2] : memref<1x128xf32, #tpu.memory_space<vmem>>, vector<1x128xf32>
    %c0_3 = arith.constant 0 : index
    %c0_4 = arith.constant 0 : index
    %2 = vector.load %arg3[%c0_3, %c0_4] : memref<1x128xf32, #tpu.memory_space<vmem>>, vector<1x128xf32>
    %cst = arith.constant dense<0.000000e+00> : vector<8xf32>
    %3 = vector.multi_reduction <add>, %0, %cst [1] : vector<8x128xf32> to vector<8xf32>
    %4 = vector.shape_cast %3 : vector<8xf32> to vector<8x1xf32>
    %cst_5 = arith.constant 1.280000e+02 : f32
    %5 = vector.broadcast %cst_5 : f32 to vector<8x1xf32>
    %6 = arith.divf %4, %5 : vector<8x1xf32>
    %7 = vector.broadcast %6 : vector<8x1xf32> to vector<8x128xf32>
    %8 = arith.subf %0, %7 : vector<8x128xf32>
    %9 = arith.mulf %8, %8 : vector<8x128xf32>
    %cst_6 = arith.constant dense<0.000000e+00> : vector<8xf32>
    %10 = vector.multi_reduction <add>, %9, %cst_6 [1] : vector<8x128xf32> to vector<8xf32>
    %11 = vector.shape_cast %10 : vector<8xf32> to vector<8x1xf32>
    %cst_7 = arith.constant 1.280000e+02 : f32
    %12 = vector.broadcast %cst_7 : f32 to vector<8x1xf32>
    %13 = arith.divf %11, %12 : vector<8x1xf32>
    %14 = vector.broadcast %6 : vector<8x1xf32> to vector<8x128xf32>
    %15 = arith.subf %0, %14 : vector<8x128xf32>
    %cst_8 = arith.constant 9.99999974E-6 : f32
    %16 = vector.broadcast %cst_8 : f32 to vector<8x1xf32>
    %17 = arith.addf %13, %16 : vector<8x1xf32>
    %18 = math.rsqrt %17 : vector<8x1xf32>
    %19 = vector.broadcast %18 : vector<8x1xf32> to vector<8x128xf32>
    %20 = arith.mulf %15, %19 : vector<8x128xf32>
    %21 = vector.broadcast %1 : vector<1x128xf32> to vector<8x128xf32>
    %22 = arith.mulf %20, %21 : vector<8x128xf32>
    %23 = vector.broadcast %2 : vector<1x128xf32> to vector<8x128xf32>
    %24 = arith.addf %22, %23 : vector<8x128xf32>
    %25 = arith.truncf %24 : vector<8x128xf32> to vector<8x128xbf16>
    %c0_9 = arith.constant 0 : index
    %c0_10 = arith.constant 0 : index
    %26 = vector.load %arg4[%c0_9, %c0_10] : memref<128x64xbf16, #tpu.memory_space<vmem>>, vector<128x64xbf16>
    %cst_11 = arith.constant dense<0.000000e+00> : vector<8x64xf32>
    %27 = tpu.matmul %25, %26, %cst_11 {dimension_numbers = #tpu.dot_dimension_numbers<[1], [0], [0], [1], [0, 0, 1, 1], [], []>} : vector<8x128xbf16>, vector<128x64xbf16>, vector<8x64xf32> -> vector<8x64xf32>
    %c0_12 = arith.constant 0 : index
    %c0_13 = arith.constant 0 : index
    %28 = vector.load %arg5[%c0_12, %c0_13] : memref<8x64xf32, #tpu.memory_space<vmem>>, vector<8x64xf32>
    tpu.vector_store %arg5[%c0_12, %c0_13], %27 {strides = array<i32>} : memref<8x64xf32, #tpu.memory_space<vmem>>, vector<8x64xf32>,
    return
  }
  func.func @transform_0(%arg0: i32) -> (i32, i32) {
    %c0_i32 = arith.constant 0 : i32
    %c0_i32_0 = arith.constant 0 : i32
    return %arg0, %c0_i32 : i32, i32
  }
  func.func @transform_1(%arg0: i32) -> (i32, i32) {
    %c0_i32 = arith.constant 0 : i32
    %c0_i32_0 = arith.constant 0 : i32
    %c0_i32_1 = arith.constant 0 : i32
    return %c0_i32, %c0_i32_0 : i32, i32
  }
  func.func @transform_2(%arg0: i32) -> (i32, i32) {
    %c0_i32 = arith.constant 0 : i32
    %c0_i32_0 = arith.constant 0 : i32
    %c0_i32_1 = arith.constant 0 : i32
    return %c0_i32, %c0_i32_0 : i32, i32
  }
  func.func @transform_3(%arg0: i32) -> (i32, i32) {
    %c0_i32 = arith.constant 0 : i32
    %c0_i32_0 = arith.constant 0 : i32
    %c0_i32_1 = arith.constant 0 : i32
    return %c0_i32, %c0_i32_0 : i32, i32
  }
  func.func @transform_4(%arg0: i32) -> (i32, i32) {
    %c0_i32 = arith.constant 0 : i32
    %c0_i32_0 = arith.constant 0 : i32
    return %arg0, %c0_i32 : i32, i32
  }
}

module attributes {stable_mosaic.version = 11 : i64} {
  func.func @_attn_kernel(%arg0: i32, %arg1: memref<1x4x64xf32, #tpu.memory_space<vmem>>, %arg2: memref<1x64xf32, #tpu.memory_space<vmem>>, %arg3: memref<1x64xf32, #tpu.memory_space<vmem>>, %arg4: memref<64x192xbf16, #tpu.memory_space<vmem>>, %arg5: memref<1x192xf32, #tpu.memory_space<vmem>>, %arg6: memref<64x64xbf16, #tpu.memory_space<vmem>>, %arg7: memref<1x64xf32, #tpu.memory_space<vmem>>, %arg8: memref<4x4x4xf32, #tpu.memory_space<vmem>>, %arg9: memref<1x4x64xf32, #tpu.memory_space<vmem>>, %arg10: memref<4x64xf32, #tpu.memory_space<vmem>>) attributes {dimension_semantics = [#tpu.dimension_semantics<parallel>], iteration_bounds = array<i64: 2>, scalar_prefetch = 0 : i64, scratch_operands = 1 : i64, tpu.core_type = #tpu.core_type<tc>, window_params = [{transform_indices = @transform_0, window_bounds = array<i64: 1, 4, 64>}, {pipeline_mode = #tpu.pipeline_mode<synchronous>, transform_indices = @transform_1, window_bounds = array<i64: 1, 64>}, {pipeline_mode = #tpu.pipeline_mode<synchronous>, transform_indices = @transform_2, window_bounds = array<i64: 1, 64>}, {pipeline_mode = #tpu.pipeline_mode<synchronous>, transform_indices = @transform_3, window_bounds = array<i64: 64, 192>}, {pipeline_mode = #tpu.pipeline_mode<synchronous>, transform_indices = @transform_4, window_bounds = array<i64: 1, 192>}, {pipeline_mode = #tpu.pipeline_mode<synchronous>, transform_indices = @transform_5, window_bounds = array<i64: 64, 64>}, {pipeline_mode = #tpu.pipeline_mode<synchronous>, transform_indices = @transform_6, window_bounds = array<i64: 1, 64>}, {pipeline_mode = #tpu.pipeline_mode<synchronous>, transform_indices = @transform_7, window_bounds = array<i64: 4, 4, 4>}, {transform_indices = @transform_8, window_bounds = array<i64: 1, 4, 64>}]} {
    %c0 = arith.constant 0 : index
    %c0_0 = arith.constant 0 : index
    %c0_1 = arith.constant 0 : index
    %0 = vector.load %arg1[%c0, %c0_0, %c0_1] : memref<1x4x64xf32, #tpu.memory_space<vmem>>, vector<1x4x64xf32>
    %1 = vector.shape_cast %0 : vector<1x4x64xf32> to vector<4x64xf32>
    %c0_2 = arith.constant 0 : index
    %c0_3 = arith.constant 0 : index
    %2 = vector.load %arg2[%c0_2, %c0_3] : memref<1x64xf32, #tpu.memory_space<vmem>>, vector<1x64xf32>
    %c0_4 = arith.constant 0 : index
    %c0_5 = arith.constant 0 : index
    %3 = vector.load %arg3[%c0_4, %c0_5] : memref<1x64xf32, #tpu.memory_space<vmem>>, vector<1x64xf32>
    %cst = arith.constant dense<0.000000e+00> : vector<4xf32>
    %4 = vector.multi_reduction <add>, %1, %cst [1] : vector<4x64xf32> to vector<4xf32>
    %5 = vector.shape_cast %4 : vector<4xf32> to vector<4x1xf32>
    %cst_6 = arith.constant 6.400000e+01 : f32
    %6 = vector.broadcast %cst_6 : f32 to vector<4x1xf32>
    %7 = arith.divf %5, %6 : vector<4x1xf32>
    %8 = vector.broadcast %7 : vector<4x1xf32> to vector<4x64xf32>
    %9 = arith.subf %1, %8 : vector<4x64xf32>
    %10 = arith.mulf %9, %9 : vector<4x64xf32>
    %cst_7 = arith.constant dense<0.000000e+00> : vector<4xf32>
    %11 = vector.multi_reduction <add>, %10, %cst_7 [1] : vector<4x64xf32> to vector<4xf32>
    %12 = vector.shape_cast %11 : vector<4xf32> to vector<4x1xf32>
    %cst_8 = arith.constant 6.400000e+01 : f32
    %13 = vector.broadcast %cst_8 : f32 to vector<4x1xf32>
    %14 = arith.divf %12, %13 : vector<4x1xf32>
    %15 = vector.broadcast %7 : vector<4x1xf32> to vector<4x64xf32>
    %16 = arith.subf %1, %15 : vector<4x64xf32>
    %cst_9 = arith.constant 9.99999974E-6 : f32
    %17 = vector.broadcast %cst_9 : f32 to vector<4x1xf32>
    %18 = arith.addf %14, %17 : vector<4x1xf32>
    %19 = math.rsqrt %18 : vector<4x1xf32>
    %20 = vector.broadcast %19 : vector<4x1xf32> to vector<4x64xf32>
    %21 = arith.mulf %16, %20 : vector<4x64xf32>
    %22 = vector.broadcast %2 : vector<1x64xf32> to vector<4x64xf32>
    %23 = arith.mulf %21, %22 : vector<4x64xf32>
    %24 = vector.broadcast %3 : vector<1x64xf32> to vector<4x64xf32>
    %25 = arith.addf %23, %24 : vector<4x64xf32>
    %26 = arith.truncf %25 : vector<4x64xf32> to vector<4x64xbf16>
    %c0_10 = arith.constant 0 : index
    %c0_11 = arith.constant 0 : index
    %27 = vector.load %arg4[%c0_10, %c0_11] : memref<64x192xbf16, #tpu.memory_space<vmem>>, vector<64x192xbf16>
    %cst_12 = arith.constant dense<0.000000e+00> : vector<4x192xf32>
    %28 = tpu.matmul %26, %27, %cst_12 {dimension_numbers = #tpu.dot_dimension_numbers<[1], [0], [0], [1], [0, 0, 1, 1], [], []>} : vector<4x64xbf16>, vector<64x192xbf16>, vector<4x192xf32> -> vector<4x192xf32>
    %c0_13 = arith.constant 0 : index
    %c0_14 = arith.constant 0 : index
    %29 = vector.load %arg5[%c0_13, %c0_14] : memref<1x192xf32, #tpu.memory_space<vmem>>, vector<1x192xf32>
    %30 = vector.broadcast %29 : vector<1x192xf32> to vector<4x192xf32>
    %31 = arith.addf %28, %30 : vector<4x192xf32>
    %32 = vector.extract_strided_slice %31 {offsets = [0, 0], sizes = [4, 64], strides = [1, 1]} : vector<4x192xf32> to vector<4x64xf32>
    %cst_15 = arith.constant 2.500000e-01 : f32
    %33 = vector.broadcast %cst_15 : f32 to vector<4x64xf32>
    %34 = arith.mulf %32, %33 : vector<4x64xf32>
    %35 = vector.extract_strided_slice %31 {offsets = [0, 64], sizes = [4, 64], strides = [1, 1]} : vector<4x192xf32> to vector<4x64xf32>
    %36 = vector.extract_strided_slice %31 {offsets = [0, 128], sizes = [4, 64], strides = [1, 1]} : vector<4x192xf32> to vector<4x64xf32>
    %37 = vector.extract_strided_slice %34 {offsets = [0, 0], sizes = [4, 16], strides = [1, 1]} : vector<4x64xf32> to vector<4x16xf32>
    %38 = arith.truncf %37 : vector<4x16xf32> to vector<4x16xbf16>
    %39 = vector.extract_strided_slice %35 {offsets = [0, 0], sizes = [4, 16], strides = [1, 1]} : vector<4x64xf32> to vector<4x16xf32>
    %40 = arith.truncf %39 : vector<4x16xf32> to vector<4x16xbf16>
    %41 = vector.extract_strided_slice %36 {offsets = [0, 0], sizes = [4, 16], strides = [1, 1]} : vector<4x64xf32> to vector<4x16xf32>
    %42 = arith.truncf %41 : vector<4x16xf32> to vector<4x16xbf16>
    %cst_16 = arith.constant dense<0.000000e+00> : vector<4x4xf32>
    %43 = tpu.matmul %38, %40, %cst_16 {dimension_numbers = #tpu.dot_dimension_numbers<[1], [1], [0], [0], [0, 0, 1, 0], [], []>} : vector<4x16xbf16>, vector<4x16xbf16>, vector<4x4xf32> -> vector<4x4xf32>
    %c0_17 = arith.constant 0 : index
    %c0_18 = arith.constant 0 : index
    %c0_19 = arith.constant 0 : index
    %44 = vector.load %arg8[%c0_17, %c0_18, %c0_19] : memref<4x4x4xf32, #tpu.memory_space<vmem>>, vector<1x4x4xf32>
    %45 = vector.shape_cast %44 : vector<1x4x4xf32> to vector<4x4xf32>
    %46 = arith.addf %43, %45 : vector<4x4xf32>
    %cst_20 = arith.constant dense<0xFF800000> : vector<4xf32>
    %47 = vector.multi_reduction <maximumf>, %46, %cst_20 [1] : vector<4x4xf32> to vector<4xf32>
    %48 = vector.shape_cast %47 : vector<4xf32> to vector<4x1xf32>
    %49 = vector.broadcast %48 : vector<4x1xf32> to vector<4x4xf32>
    %50 = arith.subf %46, %49 : vector<4x4xf32>
    %51 = math.exp %50 : vector<4x4xf32>
    %cst_21 = arith.constant dense<0.000000e+00> : vector<4xf32>
    %52 = vector.multi_reduction <add>, %51, %cst_21 [1] : vector<4x4xf32> to vector<4xf32>
    %53 = vector.shape_cast %52 : vector<4xf32> to vector<4x1xf32>
    %54 = tpu.reciprocal %53 {approx = true} : vector<4x1xf32> -> vector<4x1xf32>
    %55 = vector.broadcast %54 : vector<4x1xf32> to vector<4x4xf32>
    %56 = arith.mulf %51, %55 : vector<4x4xf32>
    %57 = arith.truncf %56 : vector<4x4xf32> to vector<4x4xbf16>
    %cst_22 = arith.constant dense<0.000000e+00> : vector<4x16xf32>
    %58 = tpu.matmul %57, %42, %cst_22 {dimension_numbers = #tpu.dot_dimension_numbers<[1], [0], [0], [1], [0, 0, 1, 1], [], []>} : vector<4x4xbf16>, vector<4x16xbf16>, vector<4x16xf32> -> vector<4x16xf32>
    %c0_23 = arith.constant 0 : index
    %c0_24 = arith.constant 0 : index
    %59 = vector.load %arg10[%c0_23, %c0_24] : memref<4x64xf32, #tpu.memory_space<vmem>>, vector<4x16xf32>
    tpu.vector_store %arg10[%c0_23, %c0_24], %58 {strides = array<i32>} : memref<4x64xf32, #tpu.memory_space<vmem>>, vector<4x16xf32>,
    %60 = vector.extract_strided_slice %34 {offsets = [0, 16], sizes = [4, 16], strides = [1, 1]} : vector<4x64xf32> to vector<4x16xf32>
    %61 = arith.truncf %60 : vector<4x16xf32> to vector<4x16xbf16>
    %62 = vector.extract_strided_slice %35 {offsets = [0, 16], sizes = [4, 16], strides = [1, 1]} : vector<4x64xf32> to vector<4x16xf32>
    %63 = arith.truncf %62 : vector<4x16xf32> to vector<4x16xbf16>
    %64 = vector.extract_strided_slice %36 {offsets = [0, 16], sizes = [4, 16], strides = [1, 1]} : vector<4x64xf32> to vector<4x16xf32>
    %65 = arith.truncf %64 : vector<4x16xf32> to vector<4x16xbf16>
    %cst_25 = arith.constant dense<0.000000e+00> : vector<4x4xf32>
    %66 = tpu.matmul %61, %63, %cst_25 {dimension_numbers = #tpu.dot_dimension_numbers<[1], [1], [0], [0], [0, 0, 1, 0], [], []>} : vector<4x16xbf16>, vector<4x16xbf16>, vector<4x4xf32> -> vector<4x4xf32>
    %c1 = arith.constant 1 : index
    %c0_26 = arith.constant 0 : index
    %c0_27 = arith.constant 0 : index
    %67 = vector.load %arg8[%c1, %c0_26, %c0_27] : memref<4x4x4xf32, #tpu.memory_space<vmem>>, vector<1x4x4xf32>
    %68 = vector.shape_cast %67 : vector<1x4x4xf32> to vector<4x4xf32>
    %69 = arith.addf %66, %68 : vector<4x4xf32>
    %cst_28 = arith.constant dense<0xFF800000> : vector<4xf32>
    %70 = vector.multi_reduction <maximumf>, %69, %cst_28 [1] : vector<4x4xf32> to vector<4xf32>
    %71 = vector.shape_cast %70 : vector<4xf32> to vector<4x1xf32>
    %72 = vector.broadcast %71 : vector<4x1xf32> to vector<4x4xf32>
    %73 = arith.subf %69, %72 : vector<4x4xf32>
    %74 = math.exp %73 : vector<4x4xf32>
    %cst_29 = arith.constant dense<0.000000e+00> : vector<4xf32>
    %75 = vector.multi_reduction <add>, %74, %cst_29 [1] : vector<4x4xf32> to vector<4xf32>
    %76 = vector.shape_cast %75 : vector<4xf32> to vector<4x1xf32>
    %77 = tpu.reciprocal %76 {approx = true} : vector<4x1xf32> -> vector<4x1xf32>
    %78 = vector.broadcast %77 : vector<4x1xf32> to vector<4x4xf32>
    %79 = arith.mulf %74, %78 : vector<4x4xf32>
    %80 = arith.truncf %79 : vector<4x4xf32> to vector<4x4xbf16>
    %cst_30 = arith.constant dense<0.000000e+00> : vector<4x16xf32>
    %81 = tpu.matmul %80, %65, %cst_30 {dimension_numbers = #tpu.dot_dimension_numbers<[1], [0], [0], [1], [0, 0, 1, 1], [], []>} : vector<4x4xbf16>, vector<4x16xbf16>, vector<4x16xf32> -> vector<4x16xf32>
    %c0_31 = arith.constant 0 : index
    %c16 = arith.constant 16 : index
    %82 = vector.load %arg10[%c0_31, %c16] : memref<4x64xf32, #tpu.memory_space<vmem>>, vector<4x16xf32>
    tpu.vector_store %arg10[%c0_31, %c16], %81 {strides = array<i32>} : memref<4x64xf32, #tpu.memory_space<vmem>>, vector<4x16xf32>,
    %83 = vector.extract_strided_slice %34 {offsets = [0, 32], sizes = [4, 16], strides = [1, 1]} : vector<4x64xf32> to vector<4x16xf32>
    %84 = arith.truncf %83 : vector<4x16xf32> to vector<4x16xbf16>
    %85 = vector.extract_strided_slice %35 {offsets = [0, 32], sizes = [4, 16], strides = [1, 1]} : vector<4x64xf32> to vector<4x16xf32>
    %86 = arith.truncf %85 : vector<4x16xf32> to vector<4x16xbf16>
    %87 = vector.extract_strided_slice %36 {offsets = [0, 32], sizes = [4, 16], strides = [1, 1]} : vector<4x64xf32> to vector<4x16xf32>
    %88 = arith.truncf %87 : vector<4x16xf32> to vector<4x16xbf16>
    %cst_32 = arith.constant dense<0.000000e+00> : vector<4x4xf32>
    %89 = tpu.matmul %84, %86, %cst_32 {dimension_numbers = #tpu.dot_dimension_numbers<[1], [1], [0], [0], [0, 0, 1, 0], [], []>} : vector<4x16xbf16>, vector<4x16xbf16>, vector<4x4xf32> -> vector<4x4xf32>
    %c2 = arith.constant 2 : index
    %c0_33 = arith.constant 0 : index
    %c0_34 = arith.constant 0 : index
    %90 = vector.load %arg8[%c2, %c0_33, %c0_34] : memref<4x4x4xf32, #tpu.memory_space<vmem>>, vector<1x4x4xf32>
    %91 = vector.shape_cast %90 : vector<1x4x4xf32> to vector<4x4xf32>
    %92 = arith.addf %89, %91 : vector<4x4xf32>
    %cst_35 = arith.constant dense<0xFF800000> : vector<4xf32>
    %93 = vector.multi_reduction <maximumf>, %92, %cst_35 [1] : vector<4x4xf32> to vector<4xf32>
    %94 = vector.shape_cast %93 : vector<4xf32> to vector<4x1xf32>
    %95 = vector.broadcast %94 : vector<4x1xf32> to vector<4x4xf32>
    %96 = arith.subf %92, %95 : vector<4x4xf32>
    %97 = math.exp %96 : vector<4x4xf32>
    %cst_36 = arith.constant dense<0.000000e+00> : vector<4xf32>
    %98 = vector.multi_reduction <add>, %97, %cst_36 [1] : vector<4x4xf32> to vector<4xf32>
    %99 = vector.shape_cast %98 : vector<4xf32> to vector<4x1xf32>
    %100 = tpu.reciprocal %99 {approx = true} : vector<4x1xf32> -> vector<4x1xf32>
    %101 = vector.broadcast %100 : vector<4x1xf32> to vector<4x4xf32>
    %102 = arith.mulf %97, %101 : vector<4x4xf32>
    %103 = arith.truncf %102 : vector<4x4xf32> to vector<4x4xbf16>
    %cst_37 = arith.constant dense<0.000000e+00> : vector<4x16xf32>
    %104 = tpu.matmul %103, %88, %cst_37 {dimension_numbers = #tpu.dot_dimension_numbers<[1], [0], [0], [1], [0, 0, 1, 1], [], []>} : vector<4x4xbf16>, vector<4x16xbf16>, vector<4x16xf32> -> vector<4x16xf32>
    %c0_38 = arith.constant 0 : index
    %c32 = arith.constant 32 : index
    %105 = vector.load %arg10[%c0_38, %c32] : memref<4x64xf32, #tpu.memory_space<vmem>>, vector<4x16xf32>
    tpu.vector_store %arg10[%c0_38, %c32], %104 {strides = array<i32>} : memref<4x64xf32, #tpu.memory_space<vmem>>, vector<4x16xf32>,
    %106 = vector.extract_strided_slice %34 {offsets = [0, 48], sizes = [4, 16], strides = [1, 1]} : vector<4x64xf32> to vector<4x16xf32>
    %107 = arith.truncf %106 : vector<4x16xf32> to vector<4x16xbf16>
    %108 = vector.extract_strided_slice %35 {offsets = [0, 48], sizes = [4, 16], strides = [1, 1]} : vector<4x64xf32> to vector<4x16xf32>
    %109 = arith.truncf %108 : vector<4x16xf32> to vector<4x16xbf16>
    %110 = vector.extract_strided_slice %36 {offsets = [0, 48], sizes = [4, 16], strides = [1, 1]} : vector<4x64xf32> to vector<4x16xf32>
    %111 = arith.truncf %110 : vector<4x16xf32> to vector<4x16xbf16>
    %cst_39 = arith.constant dense<0.000000e+00> : vector<4x4xf32>
    %112 = tpu.matmul %107, %109, %cst_39 {dimension_numbers = #tpu.dot_dimension_numbers<[1], [1], [0], [0], [0, 0, 1, 0], [], []>} : vector<4x16xbf16>, vector<4x16xbf16>, vector<4x4xf32> -> vector<4x4xf32>
    %c3 = arith.constant 3 : index
    %c0_40 = arith.constant 0 : index
    %c0_41 = arith.constant 0 : index
    %113 = vector.load %arg8[%c3, %c0_40, %c0_41] : memref<4x4x4xf32, #tpu.memory_space<vmem>>, vector<1x4x4xf32>
    %114 = vector.shape_cast %113 : vector<1x4x4xf32> to vector<4x4xf32>
    %115 = arith.addf %112, %114 : vector<4x4xf32>
    %cst_42 = arith.constant dense<0xFF800000> : vector<4xf32>
    %116 = vector.multi_reduction <maximumf>, %115, %cst_42 [1] : vector<4x4xf32> to vector<4xf32>
    %117 = vector.shape_cast %116 : vector<4xf32> to vector<4x1xf32>
    %118 = vector.broadcast %117 : vector<4x1xf32> to vector<4x4xf32>
    %119 = arith.subf %115, %118 : vector<4x4xf32>
    %120 = math.exp %119 : vector<4x4xf32>
    %cst_43 = arith.constant dense<0.000000e+00> : vector<4xf32>
    %121 = vector.multi_reduction <add>, %120, %cst_43 [1] : vector<4x4xf32> to vector<4xf32>
    %122 = vector.shape_cast %121 : vector<4xf32> to vector<4x1xf32>
    %123 = tpu.reciprocal %122 {approx = true} : vector<4x1xf32> -> vector<4x1xf32>
    %124 = vector.broadcast %123 : vector<4x1xf32> to vector<4x4xf32>
    %125 = arith.mulf %120, %124 : vector<4x4xf32>
    %126 = arith.truncf %125 : vector<4x4xf32> to vector<4x4xbf16>
    %cst_44 = arith.constant dense<0.000000e+00> : vector<4x16xf32>
    %127 = tpu.matmul %126, %111, %cst_44 {dimension_numbers = #tpu.dot_dimension_numbers<[1], [0], [0], [1], [0, 0, 1, 1], [], []>} : vector<4x4xbf16>, vector<4x16xbf16>, vector<4x16xf32> -> vector<4x16xf32>
    %c0_45 = arith.constant 0 : index
    %c48 = arith.constant 48 : index
    %128 = vector.load %arg10[%c0_45, %c48] : memref<4x64xf32, #tpu.memory_space<vmem>>, vector<4x16xf32>
    tpu.vector_store %arg10[%c0_45, %c48], %127 {strides = array<i32>} : memref<4x64xf32, #tpu.memory_space<vmem>>, vector<4x16xf32>,
    %c0_46 = arith.constant 0 : index
    %c0_47 = arith.constant 0 : index
    %129 = vector.load %arg10[%c0_46, %c0_47] : memref<4x64xf32, #tpu.memory_space<vmem>>, vector<4x64xf32>
    %130 = arith.truncf %129 : vector<4x64xf32> to vector<4x64xbf16>
    %c0_48 = arith.constant 0 : index
    %c0_49 = arith.constant 0 : index
    %131 = vector.load %arg6[%c0_48, %c0_49] : memref<64x64xbf16, #tpu.memory_space<vmem>>, vector<64x64xbf16>
    %cst_50 = arith.constant dense<0.000000e+00> : vector<4x64xf32>
    %132 = tpu.matmul %130, %131, %cst_50 {dimension_numbers = #tpu.dot_dimension_numbers<[1], [0], [0], [1], [0, 0, 1, 1], [], []>} : vector<4x64xbf16>, vector<64x64xbf16>, vector<4x64xf32> -> vector<4x64xf32>
    %c0_51 = arith.constant 0 : index
    %c0_52 = arith.constant 0 : index
    %133 = vector.load %arg7[%c0_51, %c0_52] : memref<1x64xf32, #tpu.memory_space<vmem>>, vector<1x64xf32>
    %134 = vector.broadcast %133 : vector<1x64xf32> to vector<4x64xf32>
    %135 = arith.addf %132, %134 : vector<4x64xf32>
    %136 = arith.addf %1, %135 : vector<4x64xf32>
    %c0_53 = arith.constant 0 : index
    %c0_54 = arith.constant 0 : index
    %c0_55 = arith.constant 0 : index
    %137 = vector.load %arg9[%c0_53, %c0_54, %c0_55] : memref<1x4x64xf32, #tpu.memory_space<vmem>>, vector<1x4x64xf32>
    %138 = vector.shape_cast %137 : vector<1x4x64xf32> to vector<4x64xf32>
    %139 = vector.shape_cast %136 : vector<4x64xf32> to vector<1x4x64xf32>
    tpu.vector_store %arg9[%c0_53, %c0_54, %c0_55], %139 {strides = array<i32>} : memref<1x4x64xf32, #tpu.memory_space<vmem>>, vector<1x4x64xf32>,
    return
  }
  func.func @transform_0(%arg0: i32) -> (i32, i32, i32) {
    %c0_i32 = arith.constant 0 : i32
    %c0_i32_0 = arith.constant 0 : i32
    %c0_i32_1 = arith.constant 0 : i32
    return %arg0, %c0_i32, %c0_i32_0 : i32, i32, i32
  }
  func.func @transform_1(%arg0: i32) -> (i32, i32) {
    %c0_i32 = arith.constant 0 : i32
    %c0_i32_0 = arith.constant 0 : i32
    %c0_i32_1 = arith.constant 0 : i32
    return %c0_i32, %c0_i32_0 : i32, i32
  }
  func.func @transform_2(%arg0: i32) -> (i32, i32) {
    %c0_i32 = arith.constant 0 : i32
    %c0_i32_0 = arith.constant 0 : i32
    %c0_i32_1 = arith.constant 0 : i32
    return %c0_i32, %c0_i32_0 : i32, i32
  }
  func.func @transform_3(%arg0: i32) -> (i32, i32) {
    %c0_i32 = arith.constant 0 : i32
    %c0_i32_0 = arith.constant 0 : i32
    %c0_i32_1 = arith.constant 0 : i32
    return %c0_i32, %c0_i32_0 : i32, i32
  }
  func.func @transform_4(%arg0: i32) -> (i32, i32) {
    %c0_i32 = arith.constant 0 : i32
    %c0_i32_0 = arith.constant 0 : i32
    %c0_i32_1 = arith.constant 0 : i32
    return %c0_i32, %c0_i32_0 : i32, i32
  }
  func.func @transform_5(%arg0: i32) -> (i32, i32) {
    %c0_i32 = arith.constant 0 : i32
    %c0_i32_0 = arith.constant 0 : i32
    %c0_i32_1 = arith.constant 0 : i32
    return %c0_i32, %c0_i32_0 : i32, i32
  }
  func.func @transform_6(%arg0: i32) -> (i32, i32) {
    %c0_i32 = arith.constant 0 : i32
    %c0_i32_0 = arith.constant 0 : i32
    %c0_i32_1 = arith.constant 0 : i32
    return %c0_i32, %c0_i32_0 : i32, i32
  }
  func.func @transform_7(%arg0: i32) -> (i32, i32, i32) {
    %c0_i32 = arith.constant 0 : i32
    %c0_i32_0 = arith.constant 0 : i32
    %c0_i32_1 = arith.constant 0 : i32
    %c0_i32_2 = arith.constant 0 : i32
    return %c0_i32, %c0_i32_0, %c0_i32_1 : i32, i32, i32
  }
  func.func @transform_8(%arg0: i32) -> (i32, i32, i32) {
    %c0_i32 = arith.constant 0 : i32
    %c0_i32_0 = arith.constant 0 : i32
    %c0_i32_1 = arith.constant 0 : i32
    return %arg0, %c0_i32, %c0_i32_0 : i32, i32, i32
  }
}

module attributes {stable_mosaic.version = 11 : i64} {
  func.func @_mlp_kernel(%arg0: i32, %arg1: memref<8x64xf32, #tpu.memory_space<vmem>>, %arg2: memref<1x64xf32, #tpu.memory_space<vmem>>, %arg3: memref<1x64xf32, #tpu.memory_space<vmem>>, %arg4: memref<64x256xbf16, #tpu.memory_space<vmem>>, %arg5: memref<1x256xf32, #tpu.memory_space<vmem>>, %arg6: memref<256x64xbf16, #tpu.memory_space<vmem>>, %arg7: memref<1x64xf32, #tpu.memory_space<vmem>>, %arg8: memref<8x64xf32, #tpu.memory_space<vmem>>) attributes {dimension_semantics = [#tpu.dimension_semantics<parallel>], iteration_bounds = array<i64: 1>, scalar_prefetch = 0 : i64, scratch_operands = 0 : i64, tpu.core_type = #tpu.core_type<tc>, window_params = [{transform_indices = @transform_0, window_bounds = array<i64: 8, 64>}, {pipeline_mode = #tpu.pipeline_mode<synchronous>, transform_indices = @transform_1, window_bounds = array<i64: 1, 64>}, {pipeline_mode = #tpu.pipeline_mode<synchronous>, transform_indices = @transform_2, window_bounds = array<i64: 1, 64>}, {pipeline_mode = #tpu.pipeline_mode<synchronous>, transform_indices = @transform_3, window_bounds = array<i64: 64, 256>}, {pipeline_mode = #tpu.pipeline_mode<synchronous>, transform_indices = @transform_4, window_bounds = array<i64: 1, 256>}, {pipeline_mode = #tpu.pipeline_mode<synchronous>, transform_indices = @transform_5, window_bounds = array<i64: 256, 64>}, {pipeline_mode = #tpu.pipeline_mode<synchronous>, transform_indices = @transform_6, window_bounds = array<i64: 1, 64>}, {transform_indices = @transform_7, window_bounds = array<i64: 8, 64>}]} {
    %c0 = arith.constant 0 : index
    %c0_0 = arith.constant 0 : index
    %0 = vector.load %arg1[%c0, %c0_0] : memref<8x64xf32, #tpu.memory_space<vmem>>, vector<8x64xf32>
    %c0_1 = arith.constant 0 : index
    %c0_2 = arith.constant 0 : index
    %1 = vector.load %arg2[%c0_1, %c0_2] : memref<1x64xf32, #tpu.memory_space<vmem>>, vector<1x64xf32>
    %c0_3 = arith.constant 0 : index
    %c0_4 = arith.constant 0 : index
    %2 = vector.load %arg3[%c0_3, %c0_4] : memref<1x64xf32, #tpu.memory_space<vmem>>, vector<1x64xf32>
    %cst = arith.constant dense<0.000000e+00> : vector<8xf32>
    %3 = vector.multi_reduction <add>, %0, %cst [1] : vector<8x64xf32> to vector<8xf32>
    %4 = vector.shape_cast %3 : vector<8xf32> to vector<8x1xf32>
    %cst_5 = arith.constant 6.400000e+01 : f32
    %5 = vector.broadcast %cst_5 : f32 to vector<8x1xf32>
    %6 = arith.divf %4, %5 : vector<8x1xf32>
    %7 = vector.broadcast %6 : vector<8x1xf32> to vector<8x64xf32>
    %8 = arith.subf %0, %7 : vector<8x64xf32>
    %9 = arith.mulf %8, %8 : vector<8x64xf32>
    %cst_6 = arith.constant dense<0.000000e+00> : vector<8xf32>
    %10 = vector.multi_reduction <add>, %9, %cst_6 [1] : vector<8x64xf32> to vector<8xf32>
    %11 = vector.shape_cast %10 : vector<8xf32> to vector<8x1xf32>
    %cst_7 = arith.constant 6.400000e+01 : f32
    %12 = vector.broadcast %cst_7 : f32 to vector<8x1xf32>
    %13 = arith.divf %11, %12 : vector<8x1xf32>
    %14 = vector.broadcast %6 : vector<8x1xf32> to vector<8x64xf32>
    %15 = arith.subf %0, %14 : vector<8x64xf32>
    %cst_8 = arith.constant 9.99999974E-6 : f32
    %16 = vector.broadcast %cst_8 : f32 to vector<8x1xf32>
    %17 = arith.addf %13, %16 : vector<8x1xf32>
    %18 = math.rsqrt %17 : vector<8x1xf32>
    %19 = vector.broadcast %18 : vector<8x1xf32> to vector<8x64xf32>
    %20 = arith.mulf %15, %19 : vector<8x64xf32>
    %21 = vector.broadcast %1 : vector<1x64xf32> to vector<8x64xf32>
    %22 = arith.mulf %20, %21 : vector<8x64xf32>
    %23 = vector.broadcast %2 : vector<1x64xf32> to vector<8x64xf32>
    %24 = arith.addf %22, %23 : vector<8x64xf32>
    %25 = arith.truncf %24 : vector<8x64xf32> to vector<8x64xbf16>
    %c0_9 = arith.constant 0 : index
    %c0_10 = arith.constant 0 : index
    %26 = vector.load %arg4[%c0_9, %c0_10] : memref<64x256xbf16, #tpu.memory_space<vmem>>, vector<64x256xbf16>
    %cst_11 = arith.constant dense<0.000000e+00> : vector<8x256xf32>
    %27 = tpu.matmul %25, %26, %cst_11 {dimension_numbers = #tpu.dot_dimension_numbers<[1], [0], [0], [1], [0, 0, 1, 1], [], []>} : vector<8x64xbf16>, vector<64x256xbf16>, vector<8x256xf32> -> vector<8x256xf32>
    %c0_12 = arith.constant 0 : index
    %c0_13 = arith.constant 0 : index
    %28 = vector.load %arg5[%c0_12, %c0_13] : memref<1x256xf32, #tpu.memory_space<vmem>>, vector<1x256xf32>
    %29 = vector.broadcast %28 : vector<1x256xf32> to vector<8x256xf32>
    %30 = arith.addf %27, %29 : vector<8x256xf32>
    %31 = arith.mulf %30, %30 : vector<8x256xf32>
    %32 = arith.mulf %30, %31 : vector<8x256xf32>
    %cst_14 = arith.constant 4.471500e-02 : f32
    %33 = vector.broadcast %cst_14 : f32 to vector<8x256xf32>
    %34 = arith.mulf %33, %32 : vector<8x256xf32>
    %35 = arith.addf %30, %34 : vector<8x256xf32>
    %cst_15 = arith.constant 0.797884583 : f32
    %36 = vector.broadcast %cst_15 : f32 to vector<8x256xf32>
    %37 = arith.mulf %36, %35 : vector<8x256xf32>
    %38 = math.tanh %37 : vector<8x256xf32>
    %cst_16 = arith.constant 1.000000e+00 : f32
    %39 = vector.broadcast %cst_16 : f32 to vector<8x256xf32>
    %40 = arith.addf %39, %38 : vector<8x256xf32>
    %cst_17 = arith.constant 5.000000e-01 : f32
    %41 = vector.broadcast %cst_17 : f32 to vector<8x256xf32>
    %42 = arith.mulf %41, %40 : vector<8x256xf32>
    %43 = arith.mulf %30, %42 : vector<8x256xf32>
    %44 = arith.truncf %43 : vector<8x256xf32> to vector<8x256xbf16>
    %c0_18 = arith.constant 0 : index
    %c0_19 = arith.constant 0 : index
    %45 = vector.load %arg6[%c0_18, %c0_19] : memref<256x64xbf16, #tpu.memory_space<vmem>>, vector<256x64xbf16>
    %cst_20 = arith.constant dense<0.000000e+00> : vector<8x64xf32>
    %46 = tpu.matmul %44, %45, %cst_20 {dimension_numbers = #tpu.dot_dimension_numbers<[1], [0], [0], [1], [0, 0, 1, 1], [], []>} : vector<8x256xbf16>, vector<256x64xbf16>, vector<8x64xf32> -> vector<8x64xf32>
    %c0_21 = arith.constant 0 : index
    %c0_22 = arith.constant 0 : index
    %47 = vector.load %arg7[%c0_21, %c0_22] : memref<1x64xf32, #tpu.memory_space<vmem>>, vector<1x64xf32>
    %48 = vector.broadcast %47 : vector<1x64xf32> to vector<8x64xf32>
    %49 = arith.addf %46, %48 : vector<8x64xf32>
    %50 = arith.addf %0, %49 : vector<8x64xf32>
    %c0_23 = arith.constant 0 : index
    %c0_24 = arith.constant 0 : index
    %51 = vector.load %arg8[%c0_23, %c0_24] : memref<8x64xf32, #tpu.memory_space<vmem>>, vector<8x64xf32>
    tpu.vector_store %arg8[%c0_23, %c0_24], %50 {strides = array<i32>} : memref<8x64xf32, #tpu.memory_space<vmem>>, vector<8x64xf32>,
    return
  }
  func.func @transform_0(%arg0: i32) -> (i32, i32) {
    %c0_i32 = arith.constant 0 : i32
    %c0_i32_0 = arith.constant 0 : i32
    return %arg0, %c0_i32 : i32, i32
  }
  func.func @transform_1(%arg0: i32) -> (i32, i32) {
    %c0_i32 = arith.constant 0 : i32
    %c0_i32_0 = arith.constant 0 : i32
    %c0_i32_1 = arith.constant 0 : i32
    return %c0_i32, %c0_i32_0 : i32, i32
  }
  func.func @transform_2(%arg0: i32) -> (i32, i32) {
    %c0_i32 = arith.constant 0 : i32
    %c0_i32_0 = arith.constant 0 : i32
    %c0_i32_1 = arith.constant 0 : i32
    return %c0_i32, %c0_i32_0 : i32, i32
  }
  func.func @transform_3(%arg0: i32) -> (i32, i32) {
    %c0_i32 = arith.constant 0 : i32
    %c0_i32_0 = arith.constant 0 : i32
    %c0_i32_1 = arith.constant 0 : i32
    return %c0_i32, %c0_i32_0 : i32, i32
  }
  func.func @transform_4(%arg0: i32) -> (i32, i32) {
    %c0_i32 = arith.constant 0 : i32
    %c0_i32_0 = arith.constant 0 : i32
    %c0_i32_1 = arith.constant 0 : i32
    return %c0_i32, %c0_i32_0 : i32, i32
  }
  func.func @transform_5(%arg0: i32) -> (i32, i32) {
    %c0_i32 = arith.constant 0 : i32
    %c0_i32_0 = arith.constant 0 : i32
    %c0_i32_1 = arith.constant 0 : i32
    return %c0_i32, %c0_i32_0 : i32, i32
  }
  func.func @transform_6(%arg0: i32) -> (i32, i32) {
    %c0_i32 = arith.constant 0 : i32
    %c0_i32_0 = arith.constant 0 : i32
    %c0_i32_1 = arith.constant 0 : i32
    return %c0_i32, %c0_i32_0 : i32, i32
  }
  func.func @transform_7(%arg0: i32) -> (i32, i32) {
    %c0_i32 = arith.constant 0 : i32
    %c0_i32_0 = arith.constant 0 : i32
    return %arg0, %c0_i32 : i32, i32
  }
}

</mosaic_0001>

<bundles_post_ra>
// kernel: wrapper2d_pretrain_forward.6
= control target key start
LH: loop header
LB: loop body
LE: loop exit
PB: predicated region body
PF: predicated region fallthrough
CT: control target
= control target key end

     0   :  { %vm63_vm0 = vcmask 523264   ;;  %vm91_vm1 = vcmask 261120   ;;  %v249_v23 = vmov 32.0   ;;  %s352_s1 = inlined_call_operand.vmem [shape: bf16[64,32], index: 1, kind: input, shape index: {}]   ;;  %s353_s2 = inlined_call_operand.vmem [shape: f32[1,32], index: 2, kind: input, shape index: {}]   ;;  %s354_s0 = inlined_call_operand.vmem [shape: f32[32,64], index: 0, kind: input, shape index: {}]   ;;  %s355_s3 = inlined_call_operand.vmem [shape: f32[1,32], index: 3, kind: input, shape index: {}]   ;;  %s356_s4 = inlined_call_operand.vmem [shape: f32[1,32], index: 4, kind: input, shape index: {}]   ;;  %s357_s5 = inlined_call_operand.vmem [shape: f32[32,32], index: 5, kind: output, shape index: {}]  }
   0x1   :  { %v230_v0 = vld [vmem:[%s352_s1 + $0x18] sm:$0xff]  ;;  %v229_v1 = vld [vmem:[%s352_s1 + $0x10] sm:$0xff]  ;;  %v228_v2 = vld [vmem:[%s352_s1 + $0x8] sm:$0xff]  ;;  %239 = vrcp.f32 %v249_v23 }
   0x2   :  { %74 = vmatpush.bf16.msra.mxu0 %v230_v0  ;;  %231 = vmatpush.bf16.msra.mxu1 %v230_v0  ;;  %v227_v3 = vld [vmem:[%s352_s1] sm:$0xff]  ;;  %v22_v5 = vld [vmem:[%s354_s0 + $0x8] sm:$0xff]  ;;  %v23_v6 = vld [vmem:[%s354_s0 + $0x10] sm:$0xff] }
   0x3   :  { %v21_v4 = vld [vmem:[%s354_s0] sm:$0xff]  ;;  %v24_v7 = vld [vmem:[%s354_s0 + $0x18] sm:$0xff] }
   0x4   :  { %v25_v8 = vpack.c.bf16 %v22_v5, %v21_v4  ;;  %v26_v9 = vpack.c.bf16 %v24_v7, %v23_v6  ;;  %v236_v10 = vld [vmem:[%s353_s2] ss:$0 sm:$0xff] }
   0x6   :  { %75 = vmatpush.bf16.msra.mxu0 %v229_v1  ;;  %232 = vmatpush.bf16.msra.mxu1 %v229_v1 }
   0x7   :  { %v240_v24 = vpop.eup %239 }
   0x8   :  { %v105_v25 = vmul.f32 32.0, %v240_v24  ;;  %vm109_vm2 = vweird.f32 %v240_v24 }
   0xa   :  { %76 = vmatpush.bf16.msra.mxu0 %v228_v2  ;;  %233 = vmatpush.bf16.msra.mxu1 %v228_v2  ;;  %v106_v26 = vsub.f32 1.0, %v105_v25 }
   0xc   :  { %v107_v27 = vmul.f32 %v240_v24, %v106_v26 }
   0xe   :  { %77 = vmatpush.bf16.msra.mxu0 %v227_v3  ;;  %234 = vmatpush.bf16.msra.mxu1 %v227_v3  ;;  %v108_v28 = vadd.f32 %v240_v24, %v107_v27 }
  0x10   :  { %v110_v29 = vsel %vm109_vm2, %v240_v24, %v108_v28 }
  0x11   :  { %225 = vmatmul.msk.bf16.vlgmr.msra.gmra.mxu0 %vm63_vm0, %v25_v8  ;;  %226 = vmatmul.msk.bf16.vlgmr.msra.gmra.mxu1 %vm63_vm0, %v26_v9 }
  0x8e   :  { %v79_v11 = vpop.f32.mrf.mxu0  ;;  %v84_v12 = vpop.f32.mrf.mxu1 }
  0x8f   :  { %v80_v13 = vadd.f32 %v236_v10, %v79_v11  ;;  %v85_v14 = vadd.f32 %v236_v10, %v84_v12  ;;  %v237_v12 = vld [vmem:[%s355_s3] ss:$0 sm:$0xff] }
  0x91   :  { %v98_v15 = vsel %vm91_vm1, %v85_v14, 0.0  ;;  %v92_v16 = vsel %vm91_vm1, %v80_v13, 0.0 }
  0x92   :  { %99 = vadd.xlane.f32.xlu1 %v98_v15  ;;  %93 = vadd.xlane.f32.xlu0 %v92_v16 }
  0x96   :  { %v81_v17 = vpop.f32.mrf.mxu0  ;;  %v86_v18 = vpop.f32.mrf.mxu1 }
  0x97   :  { %v82_v19 = vadd.f32 %v236_v10, %v81_v17  ;;  %v87_v20 = vadd.f32 %v236_v10, %v86_v18  ;;  %v238_v17 = vld [vmem:[%s356_s4] ss:$0 sm:$0xff] }
  0x99   :  { %v101_v21 = vsel %vm91_vm1, %v87_v20, 0.0  ;;  %v95_v22 = vsel %vm91_vm1, %v82_v19, 0.0 }
  0x9a   :  { %102 = vadd.xlane.f32.xlu1 %v101_v21  ;;  %96 = vadd.xlane.f32.xlu0 %v95_v22 }
 0x105   :  { %v100_v30 = vpop.xlane.xlu1 %99  ;;  %v94_v31 = vpop.xlane.xlu0 %93 }
 0x106   :  { %v113_v32 = vmul.f32 %v110_v29, %v100_v30  ;;  %v111_v33 = vmul.f32 %v110_v29, %v94_v31 }
 0x108   :  { %v311_v34 = vsub.f32 %v85_v14, %v113_v32  ;;  %v115_v35 = vsub.f32 %v80_v13, %v111_v33 }
 0x10a   :  { %v121_v36 = vmul.f32 %v311_v34, %v311_v34  ;;  %v119_v37 = vmul.f32 %v115_v35, %v115_v35 }
 0x10c   :  { %v129_v38 = vsel %vm91_vm1, %v121_v36, 0.0  ;;  %v123_v39 = vsel %vm91_vm1, %v119_v37, 0.0 }
 0x10d   :  { %v103_v40 = vpop.xlane.xlu1 %102  ;;  %130 = vadd.xlane.f32.xlu0 %v129_v38  ;;  %124 = vadd.xlane.f32.xlu2 %v123_v39  ;;  %v97_v41 = vpop.xlane.xlu0 %96 }
 0x10e   :  { %v114_v42 = vmul.f32 %v110_v29, %v103_v40  ;;  %v112_v43 = vmul.f32 %v110_v29, %v97_v41 }
 0x110   :  { %v317_v44 = vsub.f32 %v87_v20, %v114_v42  ;;  %v319_v45 = vsub.f32 %v82_v19, %v112_v43 }
 0x112   :  { %v122_v46 = vmul.f32 %v317_v44, %v317_v44  ;;  %v120_v47 = vmul.f32 %v319_v45, %v319_v45 }
 0x114   :  { %v132_v48 = vsel %vm91_vm1, %v122_v46, 0.0  ;;  %v126_v49 = vsel %vm91_vm1, %v120_v47, 0.0 }
 0x115   :  { %133 = vadd.xlane.f32.xlu1 %v132_v48  ;;  %127 = vadd.xlane.f32.xlu2 %v126_v49 }
 0x180   :  { %v125_v50 = vpop.xlane.xlu2 %124  ;;  %v131_v51 = vpop.xlane.xlu0 %130 }
 0x181   :  { %v135_v52 = vmul.f32 %v125_v50, %v110_v29  ;;  %v137_v53 = vmul.f32 %v131_v51, %v110_v29 }
 0x183   :  { %v139_v54 = vadd.f32 1e-05, %v135_v52  ;;  %v141_v55 = vadd.f32 1e-05, %v137_v53 }
 0x185   :  { %241 = vrsqrt.f32 %v139_v54  ;;  %vm149_vm5 = vweird.f32 %v139_v54  ;;  %vm169_vm7 = vweird.f32 %v141_v55 }
 0x186   :  { %243 = vrsqrt.f32 %v141_v55 }
 0x188   :  { %v134_v56 = vpop.xlane.xlu1 %133  ;;  %v128_v57 = vpop.xlane.xlu2 %127 }
 0x189   :  { %v138_v58 = vmul.f32 %v134_v56, %v110_v29  ;;  %v136_v59 = vmul.f32 %v128_v57, %v110_v29 }
 0x18b   :  { %v242_v60 = vpop.eup %241  ;;  %v142_v61 = vadd.f32 1e-05, %v138_v58  ;;  %v140_v62 = vadd.f32 1e-05, %v136_v59 }
 0x18c   :  { %v244_v63 = vpop.eup %243  ;;  %v144_v0 = vmul.f32 %v242_v60, %v139_v54  ;;  %vm150_vm3 = vweird.f32 %v242_v60 }
 0x18d   :  { %v164_v1 = vmul.f32 %v244_v63, %v141_v55  ;;  %245 = vrsqrt.f32 %v142_v61  ;;  %vm170_vm4 = vweird.f32 %v244_v63  ;;  %vm151_vm6 = vmor %vm149_vm5, %vm150_vm3  ;;  %vm179_vm11 = vweird.f32 %v142_v61 }
 0x18e   :  { %v145_v2 = vmul.f32 %v242_v60, %v144_v0  ;;  %247 = vrsqrt.f32 %v140_v62  ;;  %vm171_vm8 = vmor %vm169_vm7, %vm170_vm4  ;;  %vm159_vm13 = vweird.f32 %v140_v62 }
 0x18f   :  { %v165_v3 = vmul.f32 %v244_v63, %v164_v1 }
 0x190   :  { %v146_v4 = vmul.f32 0.5, %v145_v2 }
 0x191   :  { %v166_v5 = vmul.f32 0.5, %v165_v3 }
 0x192   :  { %v147_v6 = vsub.f32 1.5, %v146_v4 }
 0x193   :  { %v246_v7 = vpop.eup %245  ;;  %v167_v8 = vsub.f32 1.5, %v166_v5 }
 0x194   :  { %v248_v9 = vpop.eup %247  ;;  %v148_v10 = vmul.f32 %v242_v60, %v147_v6  ;;  %v174_v11 = vmul.f32 %v246_v7, %v142_v61  ;;  %vm180_vm9 = vweird.f32 %v246_v7 }
 0x195   :  { %v168_v13 = vmul.f32 %v244_v63, %v167_v8  ;;  %v154_v14 = vmul.f32 %v248_v9, %v140_v62  ;;  %vm160_vm10 = vweird.f32 %v248_v9  ;;  %vm181_vm12 = vmor %vm179_vm11, %vm180_vm9 }
 0x196   :  { %v152_v15 = vsel %vm151_vm6, %v242_v60, %v148_v10  ;;  %v175_v16 = vmul.f32 %v246_v7, %v174_v11  ;;  %vm161_vm14 = vmor %vm159_vm13, %vm160_vm10 }
 0x197   :  { %v183_v18 = vmul.f32 %v152_v15, %v115_v35  ;;  %v172_v19 = vsel %vm171_vm8, %v244_v63, %v168_v13  ;;  %v155_v20 = vmul.f32 %v248_v9, %v154_v14 }
 0x198   :  { %v185_v21 = vmul.f32 %v172_v19, %v311_v34  ;;  %v176_v22 = vmul.f32 0.5, %v175_v16 }
 0x199   :  { %v190_v23 = vmul.f32 %v237_v12, %v183_v18  ;;  %v156_v24 = vmul.f32 0.5, %v155_v20 }
 0x19a   :  { %v192_v25 = vmul.f32 %v237_v12, %v185_v21  ;;  %v177_v26 = vsub.f32 1.5, %v176_v22 }
 0x19b   :  { %v197_v27 = vadd.f32 %v238_v17, %v190_v23  ;;  %v157_v28 = vsub.f32 1.5, %v156_v24 }
 0x19c   :  { %v199_v29 = vadd.f32 %v238_v17, %v192_v25  ;;  %v178_v30 = vmul.f32 %v246_v7, %v177_v26 }
 0x19d   :  { %201 = vst.msk [vmem:[%s357_s5] sm:$0xff] %vm91_vm1, %v197_v27  ;;  %v158_v31 = vmul.f32 %v248_v9, %v157_v28 }
 0x19e   :  { %203 = vst.msk [vmem:[%s357_s5 + $0x10] sm:$0xff] %vm91_vm1, %v199_v29  ;;  %v182_v32 = vsel %vm181_vm12, %v246_v7, %v178_v30 }
 0x19f   :  { %v186_v33 = vmul.f32 %v182_v32, %v317_v44  ;;  %v162_v34 = vsel %vm161_vm14, %v248_v9, %v158_v31 }
 0x1a0   :  { %v184_v35 = vmul.f32 %v162_v34, %v319_v45 }
 0x1a1   :  { %v193_v36 = vmul.f32 %v237_v12, %v186_v33 }
 0x1a2   :  { %v191_v37 = vmul.f32 %v237_v12, %v184_v35 }
 0x1a3   :  { %v200_v38 = vadd.f32 %v238_v17, %v193_v36 }
 0x1a4   :  { %v198_v39 = vadd.f32 %v238_v17, %v191_v37 }
 0x1a5   :  { %204 = vst.msk [vmem:[%s357_s5 + $0x18] sm:$0xff] %vm91_vm1, %v200_v38 }
 0x1a6   :  { %202 = vst.msk [vmem:[%s357_s5 + $0x8] sm:$0xff] %vm91_vm1, %v198_v39 }

// kernel: wrapper2d_pretrain_forward.7
= control target key start
LH: loop header
LB: loop body
LE: loop exit
PB: predicated region body
PF: predicated region fallthrough
CT: control target
= control target key end

     0   :  { %s809_s27 = smov 0   ;;  %s909_s0 = inlined_call_operand.vmem [shape: f32[2,16,32], index: 0, kind: input, shape index: {}]   ;;  %s910_s1 = inlined_call_operand.vmem [shape: f32[1,32], index: 1, kind: input, shape index: {}]   ;;  %s911_s2 = inlined_call_operand.vmem [shape: f32[1,32], index: 2, kind: input, shape index: {}]   ;;  %s912_s3 = inlined_call_operand.vmem [shape: bf16[32,96], index: 3, kind: input, shape index: {}]   ;;  %s913_s4 = inlined_call_operand.vmem [shape: f32[1,96], index: 4, kind: input, shape index: {}]   ;;  %s914_s5 = inlined_call_operand.vmem [shape: bf16[32,32], index: 5, kind: input, shape index: {}]   ;;  %s915_s6 = inlined_call_operand.vmem [shape: f32[1,32], index: 6, kind: input, shape index: {}]   ;;  %s916_s7 = inlined_call_operand.vmem [shape: f32[2,16,16], index: 7, kind: input, shape index: {}]   ;;  %s917_s8 = inlined_call_operand.vmem [shape: f32[2,16,32], index: 8, kind: output, shape index: {}]  }
   0x1 LB: > { %s667_s28 = sadd.s32 4294967295, %s755_s27   ;;  %p671_p0 = scmp.ge.s32.totalorder %s755_s27, 1  ;;  %s755_s27 = sphi %s809_s27, %s18_s27  }
   0x2   : > { %p262_p1 = scmp.lt.s32.totalorder %s755_s27, 3 }
   0x4   : > { %p263_p2 = pnand %p671_p0, %p262_p1 }
   0x5   : > { %p296_p3 = scmp.lt.s32.totalorder (!%p263_p2), %s667_s28, 1  ;;  %s758_s21 = smov (!%p263_p2), 96  }
   0x6   : > { %266 = sbr.rel (%p263_p2) target bundleno = 1350 (0x546), region = 52  ;;  %s759_s22 = smov (!%p263_p2), 112  }
   0x7   : > { %s760_s23 = smov (!%p263_p2), 80   ;;  %s761_s13 = smov (!%p263_p2), 64  }
   0x8   : > { %s762_s14 = smov (!%p263_p2), 48   ;;  %s763_s15 = smov (!%p263_p2), 16  }
   0xb   : > { %s919_s28 = smov (!%p296_p3, %s667_s28), 1  ;;  %vm311_vm0 = vcmask 261120   ;;  %v757_v4 = vmov 32.0   ;;  %v705_v21 = vld [vmem:[%s912_s3 + $0x8] sm:$0xff]  ;;  %v704_v23 = vld [vmem:[%s912_s3] sm:$0xff]  ;;  %vm420_vm8 = vcmask 130048  }
   0xc   : > { %s702_s29 = sshll.u32 %s919_s28, 4  ;;  %727 = vrcp.f32 %v757_v4  ;;  %403 = vmatpush.bf16.msra.mxu0 %v705_v21  ;;  %v723_v42 = vld [vmem:[%s910_s1] ss:$0 sm:$0xff]  ;;  %vm565_vm9 = vcmask 261248  }
   0xd   : > { %s300_s10 = scalar_lea.vmem %s909_s0, %s702_s29  ;;  %v724_v47 = vld [vmem:[%s911_s2] ss:$0 sm:$0xff]  ;;  %s305_s24 = scalar_lea.vmem %s917_s8, %s702_s29 }
   0xe   : > { %v825_v0 = vld [vmem:[%s300_s10] sm:$0xff]  ;;  %v829_v2 = vld [vmem:[%s300_s10 + $0x8] sm:$0xff] }
   0xf   : > { %v312_v1 = vsel %vm311_vm0, %v825_v0, 0.0  ;;  %v315_v3 = vsel %vm311_vm0, %v829_v2, 0.0  ;;  %v725_v53 = vld [vmem:[%s913_s4] ss:$0 sm:$0xff] }
  0x10   : > { %313 = vadd.xlane.f32.xlu0 %v312_v1  ;;  %404 = vmatpush.bf16.msra.mxu0 %v704_v23  ;;  %v415_v4 = vld [vmem:[%s916_s7] sm:$0xff] }
  0x12   : > { %v728_v5 = vpop.eup %727 }
  0x13   : > { %v319_v6 = vmul.f32 32.0, %v728_v5  ;;  %vm323_vm1 = vweird.f32 %v728_v5 }
  0x15   : > { %v320_v7 = vsub.f32 1.0, %v319_v6 }
  0x17   : > { %v321_v8 = vmul.f32 %v728_v5, %v320_v7 }
  0x18   : > { %316 = vadd.xlane.f32.xlu0 %v315_v3 }
  0x19   : > { %v322_v9 = vadd.f32 %v728_v5, %v321_v8  ;;  %v416_v8 = vld [vmem:[%s916_s7 + $0x8] sm:$0xff] }
  0x1b   : > { %v324_v10 = vsel %vm323_vm1, %v728_v5, %v322_v9 }
  0x83   : > { %v314_v11 = vpop.xlane.xlu0 %313 }
  0x84   : > { %v325_v12 = vmul.f32 %v324_v10, %v314_v11 }
  0x86   : > { %v327_v13 = vsub.f32 %v825_v0, %v325_v12  ;;  %v687_v12 = vld [vmem:[%s916_s7 + $0x10] sm:$0xff] }
  0x88   : > { %v329_v14 = vmul.f32 %v327_v13, %v327_v13 }
  0x8a   : > { %v331_v15 = vsel %vm311_vm0, %v329_v14, 0.0 }
  0x8b   : > { %332 = vadd.xlane.f32.xlu1 %v331_v15  ;;  %v317_v16 = vpop.xlane.xlu0 %316 }
  0x8c   : > { %v326_v17 = vmul.f32 %v324_v10, %v317_v16  ;;  %v688_v16 = vld [vmem:[%s916_s7 + $0x18] sm:$0xff] }
  0x8e   : > { %v328_v18 = vsub.f32 %v829_v2, %v326_v17 }
  0x90   : > { %v330_v19 = vmul.f32 %v328_v18, %v328_v18 }
  0x92   : > { %v334_v20 = vsel %vm311_vm0, %v330_v19, 0.0 }
  0x93   : > { %335 = vadd.xlane.f32.xlu1 %v334_v20 }
  0xfe   : > { %v333_v22 = vpop.xlane.xlu1 %332 }
  0xff   : > { %v337_v24 = vmul.f32 %v333_v22, %v324_v10 }
 0x101   : > { %v339_v25 = vadd.f32 1e-05, %v337_v24 }
 0x103   : > { %729 = vrsqrt.f32 %v339_v25  ;;  %vm347_vm3 = vweird.f32 %v339_v25 }
 0x106   : > { %v336_v26 = vpop.xlane.xlu1 %335 }
 0x107   : > { %v338_v27 = vmul.f32 %v336_v26, %v324_v10 }
 0x109   : > { %v730_v28 = vpop.eup %729  ;;  %v340_v29 = vadd.f32 1e-05, %v338_v27 }
 0x10a   : > { %v342_v30 = vmul.f32 %v730_v28, %v339_v25  ;;  %vm348_vm2 = vweird.f32 %v730_v28 }
 0x10b   : > { %731 = vrsqrt.f32 %v340_v29  ;;  %vm349_vm4 = vmor %vm347_vm3, %vm348_vm2  ;;  %vm357_vm6 = vweird.f32 %v340_v29 }
 0x10c   : > { %v343_v31 = vmul.f32 %v730_v28, %v342_v30 }
 0x10e   : > { %v344_v32 = vmul.f32 0.5, %v343_v31 }
 0x110   : > { %v345_v33 = vsub.f32 1.5, %v344_v32 }
 0x111   : > { %v732_v34 = vpop.eup %731 }
 0x112   : > { %v346_v35 = vmul.f32 %v730_v28, %v345_v33  ;;  %v352_v36 = vmul.f32 %v732_v34, %v340_v29  ;;  %vm358_vm5 = vweird.f32 %v732_v34 }
 0x113   : > { %vm359_vm7 = vmor %vm357_vm6, %vm358_vm5 }
 0x114   : > { %v353_v37 = vmul.f32 %v732_v34, %v352_v36  ;;  %v350_v38 = vsel %vm349_vm4, %v730_v28, %v346_v35 }
 0x115   : > { %v361_v41 = vmul.f32 %v350_v38, %v327_v13 }
 0x116   : > { %v354_v39 = vmul.f32 0.5, %v353_v37 }
 0x117   : > { %v366_v46 = vmul.f32 %v723_v42, %v361_v41 }
 0x118   : > { %v355_v40 = vsub.f32 1.5, %v354_v39 }
 0x119   : > { %v371_v49 = vadd.f32 %v724_v47, %v366_v46 }
 0x11a   : > { %v356_v43 = vmul.f32 %v732_v34, %v355_v40 }
 0x11c   : > { %v360_v44 = vsel %vm359_vm7, %v732_v34, %v356_v43 }
 0x11d   : > { %v362_v45 = vmul.f32 %v360_v44, %v328_v18 }
 0x11f   : > { %v367_v48 = vmul.f32 %v723_v42, %v362_v45 }
 0x121   : > { %v372_v50 = vadd.f32 %v724_v47, %v367_v48 }
 0x123   : > { %v373_v51 = vpack.c.bf16 %v372_v50, %v371_v49 }
 0x125   : > { %684 = vmatmul.msk.bf16.vlgmr.msra.gmra.mxu0 %vm311_vm0, %v373_v51 }
 0x1a2   : > { %v406_v52 = vpop.f32.mrf.mxu0 }
 0x1a3   : > { %v407_v54 = vadd.f32 %v725_v53, %v406_v52 }
 0x1a5   : > { %v411_v57 = vmul.f32 0.25, %v407_v54 }
 0x1aa   : > { %v408_v55 = vpop.f32.mrf.mxu0 }
 0x1ab   : > { %v409_v56 = vadd.f32 %v725_v53, %v408_v55 }
 0x1ad   : > { %v412_v58 = vmul.f32 0.25, %v409_v56  ;;  %v853_v59 = vpack.c.bf16 %v409_v56, %v407_v54 }
 0x1af   : > { %418 = vrot.lane.b32.xlu2 %v853_v59, %s758_s21  ;;  %v413_v60 = vpack.c.bf16 %v412_v58, %v411_v57 }
 0x1b1   : > { %490 = vrot.lane.b32.xlu0 %v413_v60, %s759_s22 }
 0x1b7   : > { %492 = vrot.lane.b32.xlu2 %v853_v59, %s760_s23 }
 0x209   : > { %v419_v61 = vpop.permute.xlu2 %418 }
 0x20a   : > { %v425_v62 = vsel %vm420_vm8, %v419_v61, 0 }
 0x20b   : > { %434 = vmatpush.bf16.xpose.msra.mxu1 %v425_v62  ;;  %v706_v62 = vld [vmem:[%s914_s5] sm:$0xff] }
 0x211   : > { %v493_v63 = vpop.permute.xlu2 %492 }
 0x212   : > { %685 = vmatmul.msk.bf16.vlgmr.msra.gmra.mxu1 %vm420_vm8, %v413_v60  ;;  %v498_v1 = vsel %vm420_vm8, %v493_v63, 0  ;;  %v707_v60 = vld [vmem:[%s914_s5 + $0x8] sm:$0xff] }
 0x213   : > { %507 = vmatpush.bf16.xpose.msra.mxu3 %v498_v1  ;;  %600 = vmatpush.bf16.msrb.mxu0 %v707_v60 }
 0x217   : > { %601 = vmatpush.bf16.msrb.mxu0 %v706_v62 }
 0x223   : > { %v491_v3 = vpop.permute.xlu0 %490 }
 0x224   : > { %689 = vmatmul.msk.bf16.vlgmr.msra.gmra.mxu3 %vm420_vm8, %v491_v3 }
 0x28f   : > { %v436_v5 = vpop.f32.mrf.mxu1 }
 0x290   : > { %v437_v6 = vadd.f32 %v436_v5, %v415_v4  ;;  %v726_v5 = vld [vmem:[%s915_s6] ss:$0 sm:$0xff] }
 0x292   : > { %v441_v7 = vsel %vm420_vm8, %v437_v6, -inf }
 0x293   : > { %442 = vmax.xlane.f32.xlu1 %v441_v7 }
 0x297   : > { %v438_v9 = vpop.f32.mrf.mxu1 }
 0x298   : > { %v439_v10 = vadd.f32 %v438_v9, %v416_v8 }
 0x29a   : > { %v444_v11 = vsel %vm420_vm8, %v439_v10, -inf }
 0x29b   : > { %445 = vmax.xlane.f32.xlu2 %v444_v11 }
 0x2a7   : > { %v509_v13 = vpop.f32.mrf.mxu3 }
 0x2a8   : > { %v510_v14 = vadd.f32 %v687_v12, %v509_v13 }
 0x2aa   : > { %v514_v15 = vsel %vm420_vm8, %v510_v14, -inf }
 0x2ab   : > { %515 = vmax.xlane.f32.xlu1 %v514_v15 }
 0x2af   : > { %v511_v17 = vpop.f32.mrf.mxu3 }
 0x2b0   : > { %v512_v18 = vadd.f32 %v688_v16, %v511_v17 }
 0x2b2   : > { %v517_v19 = vsel %vm420_vm8, %v512_v18, -inf }
 0x2b3   : > { %518 = vmax.xlane.f32.xlu1 %v517_v19 }
 0x2cc   : > { %464 = vrot.lane.b32.xlu1 %v853_v59, %s761_s13 }
 0x306   : > { %v443_v20 = vpop.xlane.xlu1 %442 }
 0x307   : > { %v447_v21 = vsub.f32 %v437_v6, %v443_v20 }
 0x309   : > { %v449_v22 = vmul.f32 1.442695, %v447_v21 }
 0x30b   : > { %733 = vpow2.f32 %v449_v22 }
 0x30e   : > { %v446_v23 = vpop.xlane.xlu2 %445 }
 0x30f   : > { %v448_v24 = vsub.f32 %v439_v10, %v446_v23 }
 0x311   : > { %v734_v25 = vpop.eup %733  ;;  %v451_v26 = vmul.f32 1.442695, %v448_v24 }
 0x312   : > { %v453_v27 = vsel %vm420_vm8, %v734_v25, 0.0 }
 0x313   : > { %735 = vpow2.f32 %v451_v26  ;;  %454 = vadd.xlane.f32.xlu0 %v453_v27 }
 0x319   : > { %v736_v28 = vpop.eup %735 }
 0x31a   : > { %v456_v29 = vsel %vm420_vm8, %v736_v28, 0.0 }
 0x31b   : > { %457 = vadd.xlane.f32.xlu1 %v456_v29 }
 0x31e   : > { %v516_v30 = vpop.xlane.xlu1 %515 }
 0x31f   : > { %v520_v31 = vsub.f32 %v510_v14, %v516_v30 }
 0x321   : > { %v522_v32 = vmul.f32 1.442695, %v520_v31 }
 0x323   : > { %737 = vpow2.f32 %v522_v32 }
 0x326   : > { %v519_v33 = vpop.xlane.xlu1 %518 }
 0x327   : > { %v521_v34 = vsub.f32 %v512_v18, %v519_v33 }
 0x329   : > { %v738_v35 = vpop.eup %737  ;;  %v524_v36 = vmul.f32 1.442695, %v521_v34 }
 0x32a   : > { %v526_v37 = vsel %vm420_vm8, %v738_v35, 0.0 }
 0x32b   : > { %739 = vpow2.f32 %v524_v36  ;;  %527 = vadd.xlane.f32.xlu2 %v526_v37 }
 0x331   : > { %v740_v38 = vpop.eup %739 }
 0x332   : > { %v529_v39 = vsel %vm420_vm8, %v740_v38, 0.0 }
 0x333   : > { %530 = vadd.xlane.f32.xlu2 %v529_v39 }
 0x334   : > { %537 = vrot.lane.b32.xlu1 %v853_v59, %s762_s14 }
 0x33e   : > { %v465_v40 = vpop.permute.xlu1 %464 }
 0x33f   : > { %477 = vmatpush.bf16.msra.mxu2 %v465_v40 }
 0x386   : > { %v455_v41 = vpop.xlane.xlu0 %454 }
 0x387   : > { %741 = vrcp.f32 %v455_v41 }
 0x38d   : > { %v742_v43 = vpop.eup %741 }
 0x38e   : > { %v458_v42 = vpop.xlane.xlu1 %457  ;;  %v461_v45 = vmul.f32 %v742_v43, %v734_v25 }
 0x38f   : > { %743 = vrcp.f32 %v458_v42 }
 0x395   : > { %v744_v44 = vpop.eup %743 }
 0x396   : > { %v462_v46 = vmul.f32 %v744_v44, %v736_v28 }
 0x398   : > { %v463_v47 = vpack.c.bf16 %v462_v46, %v461_v45 }
 0x39a   : > { %686 = vmatmul.msk.bf16.vlgmr.msra.gmra.mxu2 %vm420_vm8, %v463_v47 }
 0x39e   : > { %v528_v48 = vpop.xlane.xlu2 %527 }
 0x39f   : > { %745 = vrcp.f32 %v528_v48 }
 0x3a5   : > { %v746_v51 = vpop.eup %745 }
 0x3a6   : > { %v531_v49 = vpop.xlane.xlu2 %530  ;;  %v538_v50 = vpop.permute.xlu1 %537  ;;  %v534_v53 = vmul.f32 %v746_v51, %v738_v35 }
 0x3a7   : > { %747 = vrcp.f32 %v531_v49  ;;  %550 = vmatpush.bf16.msrb.mxu2 %v538_v50 }
 0x3ad   : > { %v748_v52 = vpop.eup %747 }
 0x3ae   : > { %v535_v54 = vmul.f32 %v748_v52, %v740_v38 }
 0x3b0   : > { %v536_v55 = vpack.c.bf16 %v535_v54, %v534_v53 }
 0x3b2   : > { %690 = vmatmul.msk.bf16.vlgmr.msrb.gmra.mxu2 %vm420_vm8, %v536_v55 }
 0x41d   : > { %v479_v56 = vpop.f32.mrf.mxu2 }
 0x41e   : > { %484 = vst.msk [vmem:[#allocation2] sm:$0xff] %vm420_vm8, %v479_v56 }
 0x425   : > { %v481_v57 = vpop.f32.mrf.mxu2 }
 0x426   : > { %485 = vst.msk [vmem:[#allocation2 + $0x8] sm:$0xff] %vm420_vm8, %v481_v57 }
 0x435   : > { %v552_v58 = vpop.f32.mrf.mxu2 }
 0x436   : > { %559 = vrot.lane.b32.xlu2 %v552_v58, %s763_s15 }
 0x43d   : > { %v554_v59 = vpop.f32.mrf.mxu2 }
 0x43e   : > { %561 = vrot.lane.b32.xlu0 %v554_v59, %s763_s15 }
 0x490   : > { %v560_v61 = vpop.permute.xlu2 %559 }
 0x491   : > { %566 = vst.msk [vmem:[#allocation2] sm:$0xff] %vm565_vm9, %v560_v61 }
 0x498   : > { %v568_v1 = vld [vmem:[#allocation2] sm:$0xff] }
 0x4b0   : > { %v562_v63 = vpop.permute.xlu0 %561 }
 0x4b1   : > { %567 = vst.msk [vmem:[#allocation2 + $0x8] sm:$0xff] %vm565_vm9, %v562_v63 }
 0x4b8   : > { %v569_v3 = vld [vmem:[#allocation2 + $0x8] sm:$0xff] }
 0x4b9   : > { %v570_v4 = vpack.c.bf16 %v569_v3, %v568_v1 }
 0x4bb   : > { %699 = vmatmul.msk.bf16.vlgmr.msrb.gmra.mxu0 %vm311_vm0, %v570_v4 }
 0x538   : > { %v603_v6 = vpop.f32.mrf.mxu0 }
 0x539   : > { %v604_v7 = vadd.f32 %v726_v5, %v603_v6 }
 0x53b   : > { %v608_v8 = vadd.f32 %v604_v7, %v825_v0 }
 0x53d   : > { %610 = vst.msk [vmem:[%s305_s24] sm:$0xff] %vm311_vm0, %v608_v8 }
 0x540   : > { %v605_v9 = vpop.f32.mrf.mxu0 }
 0x541   : > { %v606_v10 = vadd.f32 %v726_v5, %v605_v9 }
 0x543   : > { %v609_v11 = vadd.f32 %v606_v10, %v829_v2 }
 0x545   : > { %611 = vst.msk [vmem:[%s305_s24 + $0x8] sm:$0xff] %vm311_vm0, %v609_v11 }
 0x546 PF: > { %s18_s27 = sadd.s32 1, %s755_s27  }
 0x547   : > { %p15_p4 = scmp.ge.s32.totalorder %s18_s27, 4  }
 0x549   :  { %17 = sbr.rel (!%p15_p4) target bundleno = 1 (0x1), region = 83 }

// kernel: wrapper2d_pretrain_forward.8
= control target key start
LH: loop header
LB: loop body
LE: loop exit
PB: predicated region body
PF: predicated region fallthrough
CT: control target
= control target key end

     0   :  { %vm33_vm0 = vcmask 261120   ;;  %v410_v8 = vmov 32.0   ;;  %s571_s0 = inlined_call_operand.vmem [shape: f32[32,32], index: 0, kind: input, shape index: {}]   ;;  %s572_s1 = inlined_call_operand.vmem [shape: f32[1,32], index: 1, kind: input, shape index: {}]   ;;  %s573_s2 = inlined_call_operand.vmem [shape: f32[1,32], index: 2, kind: input, shape index: {}]   ;;  %s574_s4 = inlined_call_operand.vmem [shape: f32[1,128], index: 4, kind: input, shape index: {}]   ;;  %s575_s3 = inlined_call_operand.vmem [shape: bf16[32,128], index: 3, kind: input, shape index: {}]   ;;  %s576_s6 = inlined_call_operand.vmem [shape: f32[1,32], index: 6, kind: input, shape index: {}]   ;;  %s577_s5 = inlined_call_operand.vmem [shape: bf16[128,32], index: 5, kind: input, shape index: {}]   ;;  %s578_s7 = inlined_call_operand.vmem [shape: f32[32,32], index: 7, kind: output, shape index: {}]  }
   0x1   :  { %v454_v0 = vld [vmem:[%s571_s0 + $0x10] sm:$0xff]  ;;  %v459_v1 = vld [vmem:[%s571_s0] sm:$0xff]  ;;  %v468_v4 = vld [vmem:[%s571_s0 + $0x18] sm:$0xff]  ;;  %392 = vrcp.f32 %v410_v8 }
   0x2   :  { %v40_v2 = vsel %vm33_vm0, %v454_v0, 0.0  ;;  %v34_v3 = vsel %vm33_vm0, %v459_v1, 0.0  ;;  %v473_v5 = vld [vmem:[%s571_s0 + $0x8] sm:$0xff]  ;;  %v43_v6 = vsel %vm33_vm0, %v468_v4, 0.0  ;;  %v369_v39 = vld [vmem:[%s575_s3] sm:$0xff] }
   0x3   :  { %41 = vadd.xlane.f32.xlu1 %v40_v2  ;;  %35 = vadd.xlane.f32.xlu0 %v34_v3  ;;  %v37_v7 = vsel %vm33_vm0, %v473_v5, 0.0  ;;  %v370_v35 = vld [vmem:[%s575_s3 + $0x8] sm:$0xff] }
   0x4   :  { %177 = vmatpush.bf16.msra.mxu0 %v370_v35  ;;  %v378_v35 = vld [vmem:[%s577_s5 + $0x38] sm:$0xff] }
   0x5   :  { %296 = vmatpush.bf16.msra.mxu1 %v378_v35  ;;  %379 = vmatpush.bf16.msra.mxu2 %v378_v35 }
   0x7   :  { %v393_v9 = vpop.eup %392 }
   0x8   :  { %v47_v10 = vmul.f32 32.0, %v393_v9  ;;  %vm51_vm1 = vweird.f32 %v393_v9  ;;  %178 = vmatpush.bf16.msra.mxu0 %v369_v39  ;;  %v372_v39 = vld [vmem:[%s577_s5 + $0x8] sm:$0xff] }
   0xa   :  { %v48_v11 = vsub.f32 1.0, %v47_v10 }
   0xb   :  { %44 = vadd.xlane.f32.xlu1 %v43_v6  ;;  %38 = vadd.xlane.f32.xlu0 %v37_v7 }
   0xc   :  { %v49_v12 = vmul.f32 %v393_v9, %v48_v11 }
   0xe   :  { %v50_v13 = vadd.f32 %v393_v9, %v49_v12 }
  0x10   :  { %v52_v14 = vsel %vm51_vm1, %v393_v9, %v50_v13  ;;  %v388_v9 = vld [vmem:[%s572_s1] ss:$0 sm:$0xff] }
  0x76   :  { %v42_v15 = vpop.xlane.xlu1 %41  ;;  %v36_v16 = vpop.xlane.xlu0 %35 }
  0x77   :  { %v55_v17 = vmul.f32 %v52_v14, %v42_v15  ;;  %v53_v18 = vmul.f32 %v52_v14, %v36_v16  ;;  %v389_v16 = vld [vmem:[%s573_s2] ss:$0 sm:$0xff] }
  0x79   :  { %v480_v19 = vsub.f32 %v454_v0, %v55_v17  ;;  %v483_v20 = vsub.f32 %v459_v1, %v53_v18 }
  0x7b   :  { %v63_v21 = vmul.f32 %v480_v19, %v480_v19  ;;  %v61_v22 = vmul.f32 %v483_v20, %v483_v20 }
  0x7d   :  { %v71_v23 = vsel %vm33_vm0, %v63_v21, 0.0  ;;  %v65_v24 = vsel %vm33_vm0, %v61_v22, 0.0 }
  0x7e   :  { %v45_v25 = vpop.xlane.xlu1 %44  ;;  %72 = vadd.xlane.f32.xlu0 %v71_v23  ;;  %66 = vadd.xlane.f32.xlu2 %v65_v24  ;;  %v39_v26 = vpop.xlane.xlu0 %38 }
  0x7f   :  { %v56_v27 = vmul.f32 %v52_v14, %v45_v25  ;;  %v54_v28 = vmul.f32 %v52_v14, %v39_v26 }
  0x81   :  { %v492_v29 = vsub.f32 %v468_v4, %v56_v27  ;;  %v495_v30 = vsub.f32 %v473_v5, %v54_v28 }
  0x83   :  { %v64_v31 = vmul.f32 %v492_v29, %v492_v29  ;;  %v62_v32 = vmul.f32 %v495_v30, %v495_v30 }
  0x85   :  { %v74_v33 = vsel %vm33_vm0, %v64_v31, 0.0  ;;  %v68_v34 = vsel %vm33_vm0, %v62_v32, 0.0 }
  0x86   :  { %75 = vadd.xlane.f32.xlu1 %v74_v33  ;;  %69 = vadd.xlane.f32.xlu2 %v68_v34 }
  0xf1   :  { %v67_v36 = vpop.xlane.xlu2 %66  ;;  %v73_v38 = vpop.xlane.xlu0 %72 }
  0xf2   :  { %v77_v37 = vmul.f32 %v67_v36, %v52_v14  ;;  %v79_v41 = vmul.f32 %v73_v38, %v52_v14  ;;  %v377_v36 = vld [vmem:[%s577_s5 + $0x30] sm:$0xff] }
  0xf3   :  { %297 = vmatpush.bf16.msra.mxu1 %v377_v36  ;;  %380 = vmatpush.bf16.msra.mxu2 %v377_v36  ;;  %v373_v38 = vld [vmem:[%s577_s5 + $0x10] sm:$0xff] }
  0xf4   :  { %v81_v40 = vadd.f32 1e-05, %v77_v37  ;;  %v83_v42 = vadd.f32 1e-05, %v79_v41  ;;  %v374_v37 = vld [vmem:[%s577_s5 + $0x18] sm:$0xff]  ;;  %v371_v41 = vld [vmem:[%s577_s5] sm:$0xff] }
  0xf6   :  { %394 = vrsqrt.f32 %v81_v40  ;;  %vm91_vm3 = vweird.f32 %v81_v40  ;;  %vm111_vm10 = vweird.f32 %v83_v42 }
  0xf7   :  { %396 = vrsqrt.f32 %v83_v42 }
  0xf9   :  { %v76_v43 = vpop.xlane.xlu1 %75  ;;  %v70_v44 = vpop.xlane.xlu2 %69 }
  0xfa   :  { %v80_v45 = vmul.f32 %v76_v43, %v52_v14  ;;  %v78_v46 = vmul.f32 %v70_v44, %v52_v14 }
  0xfc   :  { %v395_v47 = vpop.eup %394  ;;  %v84_v48 = vadd.f32 1e-05, %v80_v45  ;;  %v82_v49 = vadd.f32 1e-05, %v78_v46 }
  0xfd   :  { %v86_v50 = vmul.f32 %v395_v47, %v81_v40  ;;  %v397_v53 = vpop.eup %396  ;;  %vm92_vm2 = vweird.f32 %v395_v47  ;;  %v390_v40 = vld [vmem:[%s574_s4] ss:$0 sm:$0xff] }
  0xfe   :  { %398 = vrsqrt.f32 %v84_v48  ;;  %v106_v59 = vmul.f32 %v397_v53, %v83_v42  ;;  %vm93_vm4 = vmor %vm91_vm3, %vm92_vm2  ;;  %vm101_vm6 = vweird.f32 %v82_v49  ;;  %vm121_vm8 = vweird.f32 %v84_v48 }
  0xff   :  { %v87_v51 = vmul.f32 %v395_v47, %v86_v50  ;;  %400 = vrsqrt.f32 %v82_v49  ;;  %vm112_vm11 = vweird.f32 %v397_v53 }
 0x100   :  { %v107_v2 = vmul.f32 %v397_v53, %v106_v59  ;;  %vm113_vm13 = vmor %vm111_vm10, %vm112_vm11 }
 0x101   :  { %v88_v52 = vmul.f32 0.5, %v87_v51 }
 0x102   :  { %v108_v10 = vmul.f32 0.5, %v107_v2 }
 0x103   :  { %v89_v54 = vsub.f32 1.5, %v88_v52 }
 0x104   :  { %v399_v55 = vpop.eup %398  ;;  %v109_v17 = vsub.f32 1.5, %v108_v10 }
 0x105   :  { %v401_v56 = vpop.eup %400  ;;  %v116_v57 = vmul.f32 %v399_v55, %v84_v48  ;;  %v90_v58 = vmul.f32 %v395_v47, %v89_v54  ;;  %vm122_vm9 = vweird.f32 %v399_v55 }
 0x106   :  { %v96_v60 = vmul.f32 %v401_v56, %v82_v49  ;;  %vm102_vm5 = vweird.f32 %v401_v56  ;;  %vm123_vm12 = vmor %vm121_vm8, %vm122_vm9  ;;  %v110_v23 = vmul.f32 %v397_v53, %v109_v17 }
 0x107   :  { %v117_v61 = vmul.f32 %v399_v55, %v116_v57  ;;  %v94_v63 = vsel %vm93_vm4, %v395_v47, %v90_v58  ;;  %vm103_vm7 = vmor %vm101_vm6, %vm102_vm5 }
 0x108   :  { %v97_v62 = vmul.f32 %v401_v56, %v96_v60  ;;  %v125_v8 = vmul.f32 %v94_v63, %v483_v20  ;;  %v114_v26 = vsel %vm113_vm13, %v397_v53, %v110_v23 }
 0x109   :  { %v118_v6 = vmul.f32 0.5, %v117_v61  ;;  %v127_v28 = vmul.f32 %v114_v26, %v480_v19  ;;  %v376_v19 = vld [vmem:[%s577_s5 + $0x28] sm:$0xff] }
 0x10a   :  { %v98_v3 = vmul.f32 0.5, %v97_v62  ;;  %v132_v15 = vmul.f32 %v388_v9, %v125_v8  ;;  %298 = vmatpush.bf16.msra.mxu1 %v376_v19  ;;  %381 = vmatpush.bf16.msra.mxu2 %v376_v19 }
 0x10b   :  { %v119_v12 = vsub.f32 1.5, %v118_v6  ;;  %v134_v31 = vmul.f32 %v388_v9, %v127_v28 }
 0x10c   :  { %v99_v7 = vsub.f32 1.5, %v98_v3  ;;  %v139_v21 = vadd.f32 %v389_v16, %v132_v15 }
 0x10d   :  { %v120_v20 = vmul.f32 %v399_v55, %v119_v12  ;;  %v141_v33 = vadd.f32 %v389_v16, %v134_v31 }
 0x10e   :  { %v100_v11 = vmul.f32 %v401_v56, %v99_v7 }
 0x10f   :  { %v124_v25 = vsel %vm123_vm12, %v399_v55, %v120_v20 }
 0x110   :  { %v104_v13 = vsel %vm103_vm7, %v401_v56, %v100_v11  ;;  %v128_v27 = vmul.f32 %v124_v25, %v492_v29  ;;  %v375_v29 = vld [vmem:[%s577_s5 + $0x20] sm:$0xff] }
 0x111   :  { %v126_v14 = vmul.f32 %v104_v13, %v495_v30  ;;  %299 = vmatpush.bf16.msra.mxu1 %v375_v29  ;;  %382 = vmatpush.bf16.msra.mxu2 %v375_v29 }
 0x112   :  { %v135_v30 = vmul.f32 %v388_v9, %v128_v27 }
 0x113   :  { %v133_v18 = vmul.f32 %v388_v9, %v126_v14 }
 0x114   :  { %v142_v32 = vadd.f32 %v389_v16, %v135_v30  ;;  %v391_v30 = vld [vmem:[%s576_s6] ss:$0 sm:$0xff] }
 0x115   :  { %v140_v22 = vadd.f32 %v389_v16, %v133_v18  ;;  %300 = vmatpush.bf16.msra.mxu1 %v374_v37  ;;  %383 = vmatpush.bf16.msra.mxu2 %v374_v37 }
 0x116   :  { %v144_v34 = vpack.c.bf16 %v142_v32, %v141_v33 }
 0x117   :  { %v143_v24 = vpack.c.bf16 %v140_v22, %v139_v21 }
 0x119   :  { %335 = vmatmul.msk.bf16.vlgmr.msra.gmra.mxu0 %vm33_vm0, %v143_v24  ;;  %301 = vmatpush.bf16.msra.mxu1 %v373_v38 }
 0x11a   :  { %384 = vmatpush.bf16.msra.mxu2 %v373_v38 }
 0x11d   :  { %302 = vmatpush.bf16.msra.mxu1 %v372_v39 }
 0x11e   :  { %385 = vmatpush.bf16.msra.mxu2 %v372_v39 }
 0x121   :  { %303 = vmatpush.bf16.msra.mxu1 %v371_v41 }
 0x122   :  { %386 = vmatpush.bf16.msra.mxu2 %v371_v41 }
 0x129   :  { %336 = vmatmul.msk.bf16.gmra.mxu0 %vm33_vm0, %v144_v34 }
 0x196   :  { %v180_v42 = vpop.f32.mrf.mxu0 }
 0x197   :  { %v181_v43 = vadd.f32 %v390_v40, %v180_v42 }
 0x199   :  { %v190_v44 = vmul.f32 %v181_v43, %v181_v43 }
 0x19b   :  { %v194_v45 = vmul.f32 %v190_v44, %v181_v43 }
 0x19d   :  { %v198_v46 = vmul.f32 0.044715, %v194_v45 }
 0x19e   :  { %v182_v47 = vpop.f32.mrf.mxu0 }
 0x19f   :  { %v202_v48 = vadd.f32 %v198_v46, %v181_v43  ;;  %v183_v49 = vadd.f32 %v390_v40, %v182_v47 }
 0x1a1   :  { %v191_v50 = vmul.f32 %v183_v49, %v183_v49  ;;  %v206_v51 = vmul.f32 0.7978846, %v202_v48 }
 0x1a3   :  { %v195_v52 = vmul.f32 %v191_v50, %v183_v49  ;;  %402 = vtanh.f32 %v206_v51 }
 0x1a5   :  { %v199_v53 = vmul.f32 0.044715, %v195_v52 }
 0x1a6   :  { %v185_v54 = vpop.f32.mrf.mxu0 }
 0x1a7   :  { %v203_v55 = vadd.f32 %v199_v53, %v183_v49  ;;  %v186_v56 = vadd.f32 %v390_v40, %v185_v54 }
 0x1a9   :  { %v192_v57 = vmul.f32 %v186_v56, %v186_v56  ;;  %v207_v58 = vmul.f32 0.7978846, %v203_v55  ;;  %v403_v59 = vpop.eup %402 }
 0x1aa   :  { %v214_v63 = vadd.f32 1.0, %v403_v59 }
 0x1ab   :  { %v196_v60 = vmul.f32 %v192_v57, %v186_v56  ;;  %404 = vtanh.f32 %v207_v58 }
 0x1ac   :  { %v218_v10 = vmul.f32 0.5, %v214_v63 }
 0x1ad   :  { %v200_v61 = vmul.f32 0.044715, %v196_v60 }
 0x1ae   :  { %v187_v62 = vpop.f32.mrf.mxu0  ;;  %v222_v14 = vmul.f32 %v218_v10, %v181_v43 }
 0x1af   :  { %v204_v2 = vadd.f32 %v200_v61, %v186_v56  ;;  %v188_v3 = vadd.f32 %v390_v40, %v187_v62 }
 0x1b1   :  { %v405_v6 = vpop.eup %404  ;;  %v193_v7 = vmul.f32 %v188_v3, %v188_v3  ;;  %v208_v8 = vmul.f32 0.7978846, %v204_v2 }
 0x1b2   :  { %v215_v9 = vadd.f32 1.0, %v405_v6 }
 0x1b3   :  { %v197_v11 = vmul.f32 %v193_v7, %v188_v3  ;;  %406 = vtanh.f32 %v208_v8 }
 0x1b4   :  { %v219_v12 = vmul.f32 0.5, %v215_v9 }
 0x1b5   :  { %v201_v13 = vmul.f32 0.044715, %v197_v11 }
 0x1b6   :  { %v223_v15 = vmul.f32 %v219_v12, %v183_v49 }
 0x1b7   :  { %v205_v16 = vadd.f32 %v201_v13, %v188_v3 }
 0x1b8   :  { %v226_v17 = vpack.c.bf16 %v223_v15, %v222_v14 }
 0x1b9   :  { %v209_v18 = vmul.f32 0.7978846, %v205_v16  ;;  %v407_v20 = vpop.eup %406 }
 0x1ba   :  { %304 = vmatmul.bf16.vlgmr.msra.gmra.mxu1 %v226_v17  ;;  %v216_v21 = vadd.f32 1.0, %v407_v20 }
 0x1bb   :  { %408 = vtanh.f32 %v209_v18 }
 0x1bc   :  { %v220_v24 = vmul.f32 0.5, %v216_v21 }
 0x1be   :  { %v224_v26 = vmul.f32 %v220_v24, %v186_v56 }
 0x1c1   :  { %v409_v22 = vpop.eup %408 }
 0x1c2   :  { %v217_v23 = vadd.f32 1.0, %v409_v22 }
 0x1c4   :  { %v221_v25 = vmul.f32 0.5, %v217_v23 }
 0x1c6   :  { %v225_v27 = vmul.f32 %v221_v25, %v188_v3 }
 0x1c8   :  { %v227_v28 = vpack.c.bf16 %v225_v27, %v224_v26 }
 0x1ca   :  { %309 = vmatmul.bf16.vlgmr.msra.gmra.mxu2 %v227_v28 }
 0x237   :  { %v305_v31 = vpop.f32.mrf.mxu1 }
 0x238   :  { %v306_v32 = vadd.f32 %v391_v30, %v305_v31 }
 0x23a   :  { %v315_v33 = vadd.f32 %v306_v32, %v459_v1 }
 0x23c   :  { %319 = vst.msk [vmem:[%s578_s7] sm:$0xff] %vm33_vm0, %v315_v33 }
 0x23f   :  { %v307_v34 = vpop.f32.mrf.mxu1 }
 0x240   :  { %v308_v35 = vadd.f32 %v391_v30, %v307_v34 }
 0x242   :  { %v316_v36 = vadd.f32 %v308_v35, %v473_v5 }
 0x244   :  { %320 = vst.msk [vmem:[%s578_s7 + $0x8] sm:$0xff] %vm33_vm0, %v316_v36 }
 0x24d   :  { %v310_v19 = vpop.f32.mrf.mxu2 }
 0x24e   :  { %v311_v29 = vadd.f32 %v391_v30, %v310_v19 }
 0x250   :  { %v317_v37 = vadd.f32 %v311_v29, %v454_v0 }
 0x252   :  { %321 = vst.msk [vmem:[%s578_s7 + $0x10] sm:$0xff] %vm33_vm0, %v317_v37 }
 0x255   :  { %v312_v1 = vpop.f32.mrf.mxu2 }
 0x256   :  { %v313_v38 = vadd.f32 %v391_v30, %v312_v1 }
 0x258   :  { %v318_v39 = vadd.f32 %v313_v38, %v468_v4 }
 0x25a   :  { %322 = vst.msk [vmem:[%s578_s7 + $0x18] sm:$0xff] %vm33_vm0, %v318_v39 }

// kernel: wrapper2d_pretrain_forward.9
= control target key start
LH: loop header
LB: loop body
LE: loop exit
PB: predicated region body
PF: predicated region fallthrough
CT: control target
= control target key end

     0   :  { %v186_v1 = vmov 128.0   ;;  %vm133_vm4 = vcmask 523264   ;;  %s248_s0 = inlined_call_operand.vmem [shape: f32[8,128], index: 0, kind: input, shape index: {}]   ;;  %s249_s3 = inlined_call_operand.vmem [shape: bf16[128,64], index: 3, kind: input, shape index: {}]   ;;  %s250_s1 = inlined_call_operand.vmem [shape: f32[1,128], index: 1, kind: input, shape index: {}]   ;;  %s251_s2 = inlined_call_operand.vmem [shape: f32[1,128], index: 2, kind: input, shape index: {}]   ;;  %s252_s4 = inlined_call_operand.vmem [shape: f32[8,64], index: 4, kind: output, shape index: {}]  }
   0x1   :  { %v17_v0 = vld [vmem:[%s248_s0] sm:$0xff]  ;;  %182 = vrcp.f32 %v186_v1  ;;  %v178_v2 = vld [vmem:[%s249_s3 + $0x38] sm:$0xff]  ;;  %v177_v13 = vld [vmem:[%s249_s3 + $0x30] sm:$0xff] }
   0x2   :  { %20 = vadd.xlane.f32.xlu0 %v17_v0  ;;  %120 = vmatpush.bf16.msra.mxu0 %v178_v2  ;;  %v176_v14 = vld [vmem:[%s249_s3 + $0x28] sm:$0xff]  ;;  %v175_v15 = vld [vmem:[%s249_s3 + $0x20] sm:$0xff]  ;;  %v174_v16 = vld [vmem:[%s249_s3 + $0x18] sm:$0xff] }
   0x3   :  { %v173_v17 = vld [vmem:[%s249_s3 + $0x10] sm:$0xff]  ;;  %v172_v18 = vld [vmem:[%s249_s3 + $0x8] sm:$0xff]  ;;  %v171_v19 = vld [vmem:[%s249_s3] sm:$0xff] }
   0x4   :  { %v180_v29 = vld [vmem:[%s250_s1] ss:$0 sm:$0xff] }
   0x5   :  { %v181_v32 = vld [vmem:[%s251_s2] ss:$0 sm:$0xff] }
   0x6   :  { %121 = vmatpush.bf16.msra.mxu0 %v177_v13 }
   0x7   :  { %v183_v3 = vpop.eup %182 }
   0x8   :  { %v23_v4 = vmul.f32 128.0, %v183_v3  ;;  %vm27_vm0 = vweird.f32 %v183_v3 }
   0xa   :  { %v24_v5 = vsub.f32 1.0, %v23_v4  ;;  %122 = vmatpush.bf16.msra.mxu0 %v176_v14 }
   0xc   :  { %v25_v6 = vmul.f32 %v183_v3, %v24_v5 }
   0xe   :  { %v26_v7 = vadd.f32 %v183_v3, %v25_v6  ;;  %123 = vmatpush.bf16.msra.mxu0 %v175_v15 }
  0x10   :  { %v28_v8 = vsel %vm27_vm0, %v183_v3, %v26_v7 }
  0x12   :  { %124 = vmatpush.bf16.msra.mxu0 %v174_v16 }
  0x16   :  { %125 = vmatpush.bf16.msra.mxu0 %v173_v17 }
  0x1a   :  { %126 = vmatpush.bf16.msra.mxu0 %v172_v18 }
  0x1e   :  { %127 = vmatpush.bf16.msra.mxu0 %v171_v19 }
  0x75   :  { %v21_v9 = vpop.xlane.xlu0 %20 }
  0x76   :  { %v29_v10 = vmul.f32 %v28_v8, %v21_v9 }
  0x78   :  { %v30_v11 = vsub.f32 %v17_v0, %v29_v10 }
  0x7a   :  { %v31_v12 = vmul.f32 %v30_v11, %v30_v11 }
  0x7c   :  { %32 = vadd.xlane.f32.xlu0 %v31_v12 }
  0xef   :  { %v33_v20 = vpop.xlane.xlu0 %32 }
  0xf0   :  { %v34_v21 = vmul.f32 %v33_v20, %v28_v8 }
  0xf2   :  { %v35_v22 = vadd.f32 1e-05, %v34_v21 }
  0xf4   :  { %184 = vrsqrt.f32 %v35_v22  ;;  %vm42_vm2 = vweird.f32 %v35_v22 }
  0xfa   :  { %v185_v23 = vpop.eup %184 }
  0xfb   :  { %v37_v24 = vmul.f32 %v185_v23, %v35_v22  ;;  %vm43_vm1 = vweird.f32 %v185_v23 }
  0xfc   :  { %vm44_vm3 = vmor %vm42_vm2, %vm43_vm1 }
  0xfd   :  { %v38_v25 = vmul.f32 %v185_v23, %v37_v24 }
  0xff   :  { %v39_v26 = vmul.f32 0.5, %v38_v25 }
 0x101   :  { %v40_v27 = vsub.f32 1.5, %v39_v26 }
 0x103   :  { %v41_v28 = vmul.f32 %v185_v23, %v40_v27 }
 0x105   :  { %v45_v30 = vsel %vm44_vm3, %v185_v23, %v41_v28 }
 0x106   :  { %v46_v31 = vmul.f32 %v45_v30, %v30_v11 }
 0x108   :  { %v50_v33 = vmul.f32 %v180_v29, %v46_v31 }
 0x10a   :  { %v54_v34 = vadd.f32 %v181_v32, %v50_v33 }
 0x10c   :  { %v55_v35 = vpack.c.bf16 %v54_v34, %v54_v34 }
 0x10e   :  { %128 = vmatmul.bf16.vlgmr.msra.gmra.mxu0 %v55_v35 }
 0x18b   :  { %v129_v36 = vpop.f32.mrf.mxu0 }
 0x18c   :  { %134 = vst.msk [vmem:[%s252_s4] sm:$0xff] %vm133_vm4, %v129_v36 }
 0x193   :  { %v131_v37 = vpop.f32.mrf.mxu0 }

// kernel: wrapper2d_pretrain_forward.11
= control target key start
LH: loop header
LB: loop body
LE: loop exit
PB: predicated region body
PF: predicated region fallthrough
CT: control target
= control target key end

     0   :  { %vm31_vm0 = vcmask 523264   ;;  %s676_s0 = inlined_call_operand.vmem [shape: f32[8,64], index: 0, kind: input, shape index: {}]   ;;  %s677_s1 = inlined_call_operand.vmem [shape: f32[1,64], index: 1, kind: input, shape index: {}]   ;;  %s678_s2 = inlined_call_operand.vmem [shape: f32[1,64], index: 2, kind: input, shape index: {}]   ;;  %s679_s3 = inlined_call_operand.vmem [shape: bf16[64,256], index: 3, kind: input, shape index: {}]   ;;  %s680_s4 = inlined_call_operand.vmem [shape: f32[1,256], index: 4, kind: input, shape index: {}]   ;;  %s681_s5 = inlined_call_operand.vmem [shape: bf16[256,64], index: 5, kind: input, shape index: {}]   ;;  %s682_s6 = inlined_call_operand.vmem [shape: f32[1,64], index: 6, kind: input, shape index: {}]   ;;  %s683_s7 = inlined_call_operand.hbm [shape: f32[8,64], index: 7, kind: output, shape index: {}]  }
   0x1   :  { %v555_v0 = vld [vmem:[%s676_s0] sm:$0xff] }
   0x2   :  { %v32_v1 = vsel %vm31_vm0, %v555_v0, 0.0 }
   0x3   :  { %33 = vadd.xlane.f32.xlu0 %v32_v1 }
   0x4   :  { %12 = vsyncpa [#allocation3], 0  ;;  %v510_v2 = vmov 64.0   ;;  %v375_v14 = vld [vmem:[%s679_s3 + $0x30] sm:$0xf]  ;;  %v462_v38 = vld [vmem:[%s681_s5 + $0x38] sm:$0xff] }
   0x5   :  { %476 = vrcp.f32 %v510_v2  ;;  %v454_v15 = vld [vmem:[%s679_s3 + $0x34] sm:$0xf0]  ;;  %v453_v16 = vld [vmem:[%s679_s3 + $0x34] sm:$0xf]  ;;  %v377_v18 = vld [vmem:[%s679_s3 + $0x38] sm:$0xf0]  ;;  %305 = vmatpush.bf16.msra.mxu2 %v462_v38 }
   0x6   :  { %v376_v17 = vor.u32 %v454_v15, %v375_v14  ;;  %v380_v19 = vor.u32 %v453_v16, %v377_v18  ;;  %v367_v20 = vld [vmem:[%s679_s3 + $0x20] sm:$0xf]  ;;  %v452_v21 = vld [vmem:[%s679_s3 + $0x24] sm:$0xf0]  ;;  %v451_v22 = vld [vmem:[%s679_s3 + $0x24] sm:$0xf] }
   0x7   :  { %v368_v23 = vor.u32 %v452_v21, %v367_v20  ;;  %v369_v24 = vld [vmem:[%s679_s3 + $0x28] sm:$0xf0]  ;;  %v359_v26 = vld [vmem:[%s679_s3 + $0x10] sm:$0xf]  ;;  %v450_v27 = vld [vmem:[%s679_s3 + $0x14] sm:$0xf0] }
   0x8   :  { %131 = vmatpush.bf16.msra.mxu0 %v376_v17  ;;  %144 = vmatpush.bf16.msra.mxu1 %v380_v19  ;;  %v372_v25 = vor.u32 %v451_v22, %v369_v24  ;;  %v449_v28 = vld [vmem:[%s679_s3 + $0x14] sm:$0xf]  ;;  %v360_v29 = vor.u32 %v450_v27, %v359_v26  ;;  %v361_v30 = vld [vmem:[%s679_s3 + $0x18] sm:$0xf0]  ;;  %v351_v31 = vld [vmem:[%s679_s3] sm:$0xf] }
   0x9   :  { %v448_v32 = vld [vmem:[%s679_s3 + $0x4] sm:$0xf0]  ;;  %v364_v33 = vor.u32 %v449_v28, %v361_v30  ;;  %v447_v34 = vld [vmem:[%s679_s3 + $0x4] sm:$0xf]  ;;  %v353_v35 = vld [vmem:[%s679_s3 + $0x8] sm:$0xf0] }
   0xa   :  { %v352_v36 = vor.u32 %v448_v32, %v351_v31  ;;  %v356_v37 = vor.u32 %v447_v34, %v353_v35  ;;  %v470_v39 = vld [vmem:[%s681_s5 + $0x78] sm:$0xff]  ;;  %v473_v49 = vld [vmem:[%s677_s1] ss:$0 sm:$0xff]  ;;  %v461_v56 = vld [vmem:[%s681_s5 + $0x30] sm:$0xff]  ;;  %s511_s20 = smov [#allocation2]   ;;  %s340_s22 = sshll.u32 %s683_s7, 4  ;;  %s341_s22 = int_to_ptr.hbm [resolvable:$true] %s340_s22 }
   0xb   :  { %v477_v3 = vpop.eup %476  ;;  %318 = vmatpush.bf16.msra.mxu3 %v470_v39  ;;  %v474_v52 = vld [vmem:[%s678_s2] ss:$0 sm:$0xff]  ;;  %v469_v57 = vld [vmem:[%s681_s5 + $0x70] sm:$0xff]  ;;  %306 = vmatpush.bf16.msra.mxu2 %v461_v56  ;;  %v460_v58 = vld [vmem:[%s681_s5 + $0x28] sm:$0xff]  ;;  %s338_s1 = sshll.u32 %s511_s20, 4  ;;  %s339_s1 = int_to_ptr.vmem [resolvable:$true] %s338_s1 }
   0xc   :  { %v36_v4 = vmul.f32 64.0, %v477_v3  ;;  %vm40_vm1 = vweird.f32 %v477_v3  ;;  %132 = vmatpush.bf16.msra.mxu0 %v368_v23  ;;  %145 = vmatpush.bf16.msra.mxu1 %v372_v25  ;;  %v468_v59 = vld [vmem:[%s681_s5 + $0x68] sm:$0xff]  ;;  %v459_v60 = vld [vmem:[%s681_s5 + $0x20] sm:$0xff]  ;;  %v458_v62 = vld [vmem:[%s681_s5 + $0x18] sm:$0xff] }
   0xd   :  { %v467_v61 = vld [vmem:[%s681_s5 + $0x60] sm:$0xff]  ;;  %v466_v63 = vld [vmem:[%s681_s5 + $0x58] sm:$0xff]  ;;  %v457_v1 = vld [vmem:[%s681_s5 + $0x10] sm:$0xff] }
   0xe   :  { %v37_v5 = vsub.f32 1.0, %v36_v4  ;;  %v465_v2 = vld [vmem:[%s681_s5 + $0x50] sm:$0xff]  ;;  %v464_v4 = vld [vmem:[%s681_s5 + $0x48] sm:$0xff] }
   0xf   :  { %319 = vmatpush.bf16.msra.mxu3 %v469_v57  ;;  %307 = vmatpush.bf16.msra.mxu2 %v460_v58 }
  0x10   :  { %v38_v6 = vmul.f32 %v477_v3, %v37_v5  ;;  %133 = vmatpush.bf16.msra.mxu0 %v360_v29  ;;  %146 = vmatpush.bf16.msra.mxu1 %v364_v33  ;;  %v455_v5 = vld [vmem:[%s681_s5] sm:$0xff] }
  0x12   :  { %v39_v7 = vadd.f32 %v477_v3, %v38_v6  ;;  %v463_v6 = vld [vmem:[%s681_s5 + $0x40] sm:$0xff] }
  0x13   :  { %320 = vmatpush.bf16.msra.mxu3 %v468_v59  ;;  %308 = vmatpush.bf16.msra.mxu2 %v459_v60 }
  0x14   :  { %v41_v8 = vsel %vm40_vm1, %v477_v3, %v39_v7  ;;  %134 = vmatpush.bf16.msra.mxu0 %v352_v36  ;;  %147 = vmatpush.bf16.msra.mxu1 %v356_v37  ;;  %v456_v3 = vld [vmem:[%s681_s5 + $0x8] sm:$0xff]  ;;  %v78_v7 = vld [vmem:[%s680_s4] sm:$0x3] }
  0x15   :  { %v475_v36 = vld [vmem:[%s682_s6] ss:$0 sm:$0xff] }
  0x17   :  { %321 = vmatpush.bf16.msra.mxu3 %v467_v61  ;;  %309 = vmatpush.bf16.msra.mxu2 %v458_v62 }
  0x1b   :  { %322 = vmatpush.bf16.msra.mxu3 %v466_v63  ;;  %310 = vmatpush.bf16.msra.mxu2 %v457_v1 }
  0x1f   :  { %323 = vmatpush.bf16.msra.mxu3 %v465_v2  ;;  %311 = vmatpush.bf16.msra.mxu2 %v456_v3 }
  0x23   :  { %324 = vmatpush.bf16.msra.mxu3 %v464_v4  ;;  %312 = vmatpush.bf16.msra.mxu2 %v455_v5 }
  0x27   :  { %325 = vmatpush.bf16.msra.mxu3 %v463_v6 }
  0x76   :  { %v34_v9 = vpop.xlane.xlu0 %33 }
  0x77   :  { %v42_v10 = vmul.f32 %v41_v8, %v34_v9  ;;  %v81_v9 = vperm.slane %v78_v7, 1 }
  0x79   :  { %v43_v11 = vsub.f32 %v555_v0, %v42_v10 }
  0x7b   :  { %v44_v12 = vmul.f32 %v43_v11, %v43_v11 }
  0x7d   :  { %v45_v13 = vsel %vm31_vm0, %v44_v12, 0.0 }
  0x7e   :  { %46 = vadd.xlane.f32.xlu0 %v45_v13 }
  0xf1   :  { %v47_v40 = vpop.xlane.xlu0 %46 }
  0xf2   :  { %v48_v41 = vmul.f32 %v47_v40, %v41_v8  ;;  %v80_v8 = vperm.slane %v78_v7, 0 }
  0xf4   :  { %v49_v42 = vadd.f32 1e-05, %v48_v41 }
  0xf6   :  { %478 = vrsqrt.f32 %v49_v42  ;;  %vm56_vm3 = vweird.f32 %v49_v42 }
  0xfc   :  { %v479_v43 = vpop.eup %478 }
  0xfd   :  { %v51_v44 = vmul.f32 %v479_v43, %v49_v42  ;;  %vm57_vm2 = vweird.f32 %v479_v43 }
  0xfe   :  { %vm58_vm4 = vmor %vm56_vm3, %vm57_vm2 }
  0xff   :  { %v52_v45 = vmul.f32 %v479_v43, %v51_v44 }
 0x101   :  { %v53_v46 = vmul.f32 0.5, %v52_v45 }
 0x103   :  { %v54_v47 = vsub.f32 1.5, %v53_v46 }
 0x105   :  { %v55_v48 = vmul.f32 %v479_v43, %v54_v47 }
 0x107   :  { %v59_v50 = vsel %vm58_vm4, %v479_v43, %v55_v48 }
 0x108   :  { %v60_v51 = vmul.f32 %v59_v50, %v43_v11 }
 0x10a   :  { %v64_v53 = vmul.f32 %v473_v49, %v60_v51 }
 0x10c   :  { %v68_v54 = vadd.f32 %v474_v52, %v64_v53 }
 0x10e   :  { %v69_v55 = vpack.c.bf16 %v68_v54, %v68_v54 }
 0x110   :  { %381 = vmatmul.msk.bf16.vlgmr.msra.gmra.mxu0 %vm31_vm0, %v69_v55  ;;  %382 = vmatmul.msk.bf16.vlgmr.msra.gmra.mxu1 %vm31_vm0, %v69_v55 }
 0x18d   :  { %v136_v10 = vpop.f32.mrf.mxu0  ;;  %v149_v11 = vpop.f32.mrf.mxu1 }
 0x18e   :  { %v137_v12 = vadd.f32 %v136_v10, %v80_v8  ;;  %v150_v13 = vadd.f32 %v149_v11, %v81_v9 }
 0x190   :  { %v153_v14 = vmul.f32 %v137_v12, %v137_v12  ;;  %v154_v15 = vmul.f32 %v150_v13, %v150_v13 }
 0x192   :  { %v155_v16 = vmul.f32 %v153_v14, %v137_v12  ;;  %v156_v17 = vmul.f32 %v154_v15, %v150_v13 }
 0x194   :  { %v157_v18 = vmul.f32 0.044715, %v155_v16  ;;  %v158_v19 = vmul.f32 0.044715, %v156_v17 }
 0x195   :  { %v138_v20 = vpop.f32.mrf.mxu0  ;;  %v151_v21 = vpop.f32.mrf.mxu1 }
 0x196   :  { %v159_v22 = vadd.f32 %v157_v18, %v137_v12  ;;  %v160_v23 = vadd.f32 %v158_v19, %v150_v13 }
 0x198   :  { %v161_v24 = vmul.f32 0.7978846, %v159_v22  ;;  %v162_v25 = vmul.f32 0.7978846, %v160_v23 }
 0x19a   :  { %480 = vtanh.f32 %v161_v24 }
 0x19b   :  { %482 = vtanh.f32 %v162_v25 }
 0x1a0   :  { %v481_v26 = vpop.eup %480 }
 0x1a1   :  { %v483_v27 = vpop.eup %482  ;;  %v165_v28 = vadd.f32 1.0, %v481_v26 }
 0x1a2   :  { %v166_v29 = vadd.f32 1.0, %v483_v27 }
 0x1a3   :  { %v167_v30 = vmul.f32 0.5, %v165_v28 }
 0x1a4   :  { %v168_v31 = vmul.f32 0.5, %v166_v29 }
 0x1a5   :  { %v169_v32 = vmul.f32 %v167_v30, %v137_v12 }
 0x1a6   :  { %v170_v33 = vmul.f32 %v168_v31, %v150_v13 }
 0x1a7   :  { %v171_v34 = vpack.c.bf16 %v169_v32, %v169_v32 }
 0x1a8   :  { %v172_v35 = vpack.c.bf16 %v170_v33, %v170_v33 }
 0x1a9   :  { %313 = vmatmul.bf16.vlgmr.msra.gmra.mxu2 %v171_v34 }
 0x1aa   :  { %326 = vmatmul.bf16.vlgmr.msra.gmra.mxu3 %v172_v35 }
 0x22c   :  { %v314_v37 = vpop.f32.mrf.mxu2 }
 0x22d   :  { %v315_v38 = vadd.f32 %v475_v36, %v314_v37  ;;  %v327_v39 = vpop.f32.mrf.mxu3 }
 0x22f   :  { %v328_v40 = vadd.f32 %v327_v39, %v315_v38 }
 0x231   :  { %v331_v41 = vadd.f32 %v328_v40, %v555_v0 }
 0x233   :  { %332 = vst.msk [vmem:[#allocation2] sm:$0xff] %vm31_vm0, %v331_v41 }
 0x234   :  { %v316_v42 = vpop.f32.mrf.mxu2  ;;  %343 = dma.vmem_to_hbm [thread:$0]  %s339_s1, 128, %s341_s22, [#allocation3]  }
 0x235   :  { %v329_v43 = vpop.f32.mrf.mxu3 }
 0x236   :  { %508 = dma.done.wait [#allocation3], 128  }
 0x237   :  { %509 = vsyncadd [#allocation3], 4294967168 }
 0x238   :  { %348 = vsyncpa [#allocation3], 1 }

// kernel: wrapper2d_pretrain_forward.10
= control target key start
LH: loop header
LB: loop body
LE: loop exit
PB: predicated region body
PF: predicated region fallthrough
CT: control target
= control target key end

     0   :  { %s978_s27 = smov 0   ;;  %s1139_s0 = inlined_call_operand.vmem [shape: f32[2,4,64], index: 0, kind: input, shape index: {}]   ;;  %s1140_s1 = inlined_call_operand.vmem [shape: f32[1,64], index: 1, kind: input, shape index: {}]   ;;  %s1141_s2 = inlined_call_operand.vmem [shape: f32[1,64], index: 2, kind: input, shape index: {}]   ;;  %s1142_s3 = inlined_call_operand.vmem [shape: bf16[64,192], index: 3, kind: input, shape index: {}]   ;;  %s1143_s4 = inlined_call_operand.vmem [shape: f32[1,192], index: 4, kind: input, shape index: {}]   ;;  %s1144_s5 = inlined_call_operand.vmem [shape: bf16[64,64], index: 5, kind: input, shape index: {}]   ;;  %s1145_s6 = inlined_call_operand.vmem [shape: f32[1,64], index: 6, kind: input, shape index: {}]   ;;  %s1146_s7 = inlined_call_operand.vmem [shape: f32[4,4,4], index: 7, kind: input, shape index: {}]   ;;  %s1147_s8 = inlined_call_operand.vmem [shape: f32[2,4,64], index: 8, kind: output, shape index: {}]  }
   0x1 LB: > { %s795_s28 = sadd.s32 4294967295, %s923_s27   ;;  %p799_p0 = scmp.ge.s32.totalorder %s923_s27, 1  ;;  %s923_s27 = sphi %s978_s27, %s18_s27  }
   0x2   : > { %p261_p1 = scmp.lt.s32.totalorder %s923_s27, 3 }
   0x4   : > { %p262_p2 = pnand %p799_p0, %p261_p1 }
   0x5   : > { %p293_p3 = scmp.lt.s32.totalorder (!%p262_p2), %s795_s28, 1  ;;  %s926_s11 = smov (!%p262_p2), 48  }
   0x6   : > { %265 = sbr.rel (%p262_p2) target bundleno = 1763 (0x6e3), region = 52  ;;  %s927_s12 = smov (!%p262_p2), 64  }
   0x7   : > { %s928_s13 = smov (!%p262_p2), 112   ;;  %s929_s14 = smov (!%p262_p2), 80  }
   0x8   : > { %s930_s15 = smov (!%p262_p2), 96   ;;  %s931_s18 = smov (!%p262_p2), 16  }
   0x9   : > { %s932_s19 = smov (!%p262_p2), 32  }
   0xb   : > { %s1149_s28 = smov (!%p293_p3, %s795_s28), 1  ;;  %vm305_vm0 = vcmask 519168   ;;  %v925_v2 = vmov 64.0   ;;  %v828_v14 = vld [vmem:[%s1142_s3 + $0x30] sm:$0xf]  ;;  %vm398_vm5 = vcmask 523264  }
   0xc   : > { %s800_s29 = sshll.u32 %s1149_s28, 2  ;;  %897 = vrcp.f32 %v925_v2  ;;  %v873_v15 = vld [vmem:[%s1142_s3 + $0x34] sm:$0xf0]  ;;  %v872_v16 = vld [vmem:[%s1142_s3 + $0x34] sm:$0xf]  ;;  %vm473_vm6 = vcmask 1041408  }
   0xd   : > { %s296_s10 = scalar_lea.vmem %s1139_s0, %s800_s29  ;;  %v829_v17 = vor.u32 %v873_v15, %v828_v14  ;;  %v830_v18 = vld [vmem:[%s1142_s3 + $0x38] sm:$0xf0]  ;;  %v820_v20 = vld [vmem:[%s1142_s3 + $0x20] sm:$0xf]  ;;  %v871_v21 = vld [vmem:[%s1142_s3 + $0x24] sm:$0xf0] }
   0xe   : > { %v994_v0 = vld [vmem:[%s296_s10] sm:$0xf]  ;;  %v833_v19 = vor.u32 %v872_v16, %v830_v18  ;;  %v870_v22 = vld [vmem:[%s1142_s3 + $0x24] sm:$0xf]  ;;  %v821_v23 = vor.u32 %v871_v21, %v820_v20  ;;  %v822_v24 = vld [vmem:[%s1142_s3 + $0x28] sm:$0xf0] }
   0xf   : > { %v306_v1 = vsel %vm305_vm0, %v994_v0, 0.0  ;;  %406 = vmatpush.bf16.msra.mxu0 %v829_v17  ;;  %v825_v25 = vor.u32 %v870_v22, %v822_v24  ;;  %v812_v26 = vld [vmem:[%s1142_s3 + $0x10] sm:$0xf]  ;;  %v869_v27 = vld [vmem:[%s1142_s3 + $0x14] sm:$0xf0]  ;;  %vm436_vm7 = vcmask 130048  }
  0x10   : > { %307 = vadd.xlane.f32.xlu0 %v306_v1  ;;  %419 = vmatpush.bf16.msra.mxu1 %v833_v19  ;;  %v868_v28 = vld [vmem:[%s1142_s3 + $0x14] sm:$0xf]  ;;  %v813_v29 = vor.u32 %v869_v27, %v812_v26  ;;  %v814_v30 = vld [vmem:[%s1142_s3 + $0x18] sm:$0xf0]  ;;  %v804_v31 = vld [vmem:[%s1142_s3] sm:$0xf] }
  0x11   : > { %v867_v32 = vld [vmem:[%s1142_s3 + $0x4] sm:$0xf0]  ;;  %v817_v33 = vor.u32 %v868_v28, %v814_v30  ;;  %v866_v34 = vld [vmem:[%s1142_s3 + $0x4] sm:$0xf]  ;;  %v806_v35 = vld [vmem:[%s1142_s3 + $0x8] sm:$0xf0] }
  0x12   : > { %v898_v3 = vpop.eup %897  ;;  %v805_v36 = vor.u32 %v867_v32, %v804_v31  ;;  %v809_v37 = vor.u32 %v866_v34, %v806_v35  ;;  %v894_v47 = vld [vmem:[%s1140_s1] ss:$0 sm:$0xff]  ;;  %vm456_vm8 = vcmask 27648   ;;  %vm469_vm9 = vcmask 31744   ;;  %v841_v31 = vld [vmem:[%s1146_s7 + $0x8] sm:$0xf] }
  0x13   : > { %v310_v4 = vmul.f32 64.0, %v898_v3  ;;  %vm314_vm1 = vweird.f32 %v898_v3  ;;  %407 = vmatpush.bf16.msra.mxu0 %v821_v23  ;;  %v895_v50 = vld [vmem:[%s1141_s2] ss:$0 sm:$0xff]  ;;  %vm490_vm10 = vcmask 125952   ;;  %vm556_vm11 = vcmask 257152  }
  0x14   : > { %420 = vmatpush.bf16.msra.mxu1 %v825_v25  ;;  %v352_v54 = vld [vmem:[%s1143_s4] sm:$0x3]  ;;  %vm620_vm12 = vcmask 388352   ;;  %vm684_vm13 = vcmask 519552  }
  0x15   : > { %v311_v5 = vsub.f32 1.0, %v310_v4  ;;  %v354_v55 = vperm.slane %v352_v54, 0  ;;  %v355_v56 = vperm.slane %v352_v54, 1 }
  0x17   : > { %v312_v6 = vmul.f32 %v898_v3, %v311_v5  ;;  %408 = vmatpush.bf16.msra.mxu0 %v813_v29 }
  0x18   : > { %421 = vmatpush.bf16.msra.mxu1 %v817_v33 }
  0x19   : > { %v313_v7 = vadd.f32 %v898_v3, %v312_v6 }
  0x1b   : > { %v315_v8 = vsel %vm314_vm1, %v898_v3, %v313_v7  ;;  %409 = vmatpush.bf16.msra.mxu0 %v805_v36  ;;  %v838_v36 = vld [vmem:[%s1146_s7 + $0x4] sm:$0xf] }
  0x1c   : > { %422 = vmatpush.bf16.msra.mxu1 %v809_v37 }
  0x83   : > { %v308_v9 = vpop.xlane.xlu0 %307 }
  0x84   : > { %v316_v10 = vmul.f32 %v315_v8, %v308_v9  ;;  %v432_v9 = vld [vmem:[%s1146_s7] sm:$0xf] }
  0x86   : > { %v317_v11 = vsub.f32 %v994_v0, %v316_v10 }
  0x88   : > { %v318_v12 = vmul.f32 %v317_v11, %v317_v11 }
  0x8a   : > { %v319_v13 = vsel %vm305_vm0, %v318_v12, 0.0 }
  0x8b   : > { %320 = vadd.xlane.f32.xlu0 %v319_v13 }
  0xfe   : > { %v321_v38 = vpop.xlane.xlu0 %320 }
  0xff   : > { %v322_v39 = vmul.f32 %v321_v38, %v315_v8 }
 0x101   : > { %v323_v40 = vadd.f32 1e-05, %v322_v39 }
 0x103   : > { %899 = vrsqrt.f32 %v323_v40  ;;  %vm330_vm3 = vweird.f32 %v323_v40 }
 0x109   : > { %v900_v41 = vpop.eup %899 }
 0x10a   : > { %v325_v42 = vmul.f32 %v900_v41, %v323_v40  ;;  %vm331_vm2 = vweird.f32 %v900_v41 }
 0x10b   : > { %vm332_vm4 = vmor %vm330_vm3, %vm331_vm2 }
 0x10c   : > { %v326_v43 = vmul.f32 %v900_v41, %v325_v42  ;;  %v844_v42 = vld [vmem:[%s1146_s7 + $0xc] sm:$0xf] }
 0x10e   : > { %v327_v44 = vmul.f32 0.5, %v326_v43 }
 0x110   : > { %v328_v45 = vsub.f32 1.5, %v327_v44 }
 0x112   : > { %v329_v46 = vmul.f32 %v900_v41, %v328_v45 }
 0x114   : > { %v333_v48 = vsel %vm332_vm4, %v900_v41, %v329_v46 }
 0x115   : > { %v334_v49 = vmul.f32 %v333_v48, %v317_v11 }
 0x117   : > { %v338_v51 = vmul.f32 %v894_v47, %v334_v49 }
 0x119   : > { %v342_v52 = vadd.f32 %v895_v50, %v338_v51 }
 0x11b   : > { %v343_v53 = vpack.c.bf16 %v342_v52, %v342_v52 }
 0x11d   : > { %834 = vmatmul.msk.bf16.vlgmr.msra.gmra.mxu0 %vm398_vm5, %v343_v53  ;;  %835 = vmatmul.msk.bf16.vlgmr.msra.gmra.mxu1 %vm398_vm5, %v343_v53 }
 0x19a   : > { %v411_v57 = vpop.f32.mrf.mxu0  ;;  %v424_v58 = vpop.f32.mrf.mxu1 }
 0x19b   : > { %v412_v59 = vadd.f32 %v411_v57, %v354_v55  ;;  %v425_v60 = vadd.f32 %v424_v58, %v355_v56 }
 0x19d   : > { %v428_v61 = vmul.f32 0.25, %v412_v59  ;;  %v430_v62 = vpack.c.bf16 %v412_v59, %v412_v59  ;;  %v1059_v63 = vpack.c.bf16 %v425_v60, %v425_v60 }
 0x19f   : > { %v429_v1 = vpack.c.bf16 %v428_v61, %v428_v61  ;;  %497 = vrot.lane.b32.xlu2 %v430_v62, %s926_s11  ;;  %434 = vrot.lane.b32.xlu1 %v430_v62, %s927_s12  ;;  %v475_v2 = vsel %vm473_vm6, %v1059_v63, 0 }
 0x1a0   : > { %484 = vmatpush.bf16.msra.mxu3 %v475_v2 }
 0x1a1   : > { %495 = vrot.lane.b32.xlu0 %v429_v1, %s928_s13 }
 0x1a2   : > { %v413_v3 = vpop.f32.mrf.mxu0  ;;  %v426_v4 = vpop.f32.mrf.mxu1 }
 0x1a9   : > { %624 = vrot.lane.b32.xlu0 %v429_v1, %s929_s14 }
 0x1b1   : > { %560 = vrot.lane.b32.xlu0 %v429_v1, %s930_s15 }
 0x1f9   : > { %v498_v5 = vpop.permute.xlu2 %497 }
 0x1fa   : > { %v503_v6 = vsel %vm436_vm7, %v498_v5, 0 }
 0x1fb   : > { %512 = vmatpush.bf16.xpose.msrb.mxu3 %v503_v6 }
 0x211   : > { %v435_v7 = vpop.permute.xlu1 %434 }
 0x212   : > { %v441_v8 = vsel %vm436_vm7, %v435_v7, 0 }
 0x213   : > { %450 = vmatpush.bf16.xpose.msra.mxu2 %v441_v8  ;;  %v496_v20 = vpop.permute.xlu0 %495 }
 0x21a   : > { %836 = vmatmul.msk.bf16.vlgmr.msra.gmra.mxu2 %vm436_vm7, %v429_v1 }
 0x21b   : > { %v625_v26 = vpop.permute.xlu0 %624 }
 0x223   : > { %v561_v29 = vpop.permute.xlu0 %560 }
 0x29d   : > { %v452_v10 = vpop.f32.mrf.mxu2 }
 0x29e   : > { %v453_v11 = vadd.f32 %v452_v10, %v432_v9 }
 0x2a0   : > { %v457_v12 = vsel %vm456_vm8, %v453_v11, -inf }
 0x2a1   : > { %458 = vmax.xlane.f32.xlu1 %v457_v12 }
 0x2a5   : > { %v454_v13 = vpop.f32.mrf.mxu2 }
 0x314   : > { %v459_v14 = vpop.xlane.xlu1 %458 }
 0x315   : > { %v460_v15 = vsub.f32 %v453_v11, %v459_v14 }
 0x317   : > { %v461_v16 = vmul.f32 1.442695, %v460_v15 }
 0x319   : > { %901 = vpow2.f32 %v461_v16 }
 0x31f   : > { %v902_v17 = vpop.eup %901 }
 0x320   : > { %v463_v18 = vsel %vm456_vm8, %v902_v17, 0.0 }
 0x321   : > { %464 = vadd.xlane.f32.xlu2 %v463_v18 }
 0x339   : > { %626 = vrot.lane.b32.xlu2 %v430_v62, %s931_s18 }
 0x341   : > { %562 = vrot.lane.b32.xlu2 %v430_v62, %s932_s19 }
 0x394   : > { %v465_v19 = vpop.xlane.xlu2 %464 }
 0x395   : > { %903 = vrcp.f32 %v465_v19 }
 0x39b   : > { %v904_v21 = vpop.eup %903 }
 0x39c   : > { %v627_v22 = vpop.permute.xlu2 %626  ;;  %v467_v23 = vmul.f32 %v904_v21, %v902_v17 }
 0x39d   : > { %v632_v25 = vsel %vm436_vm7, %v627_v22, 0 }
 0x39e   : > { %v468_v24 = vpack.c.bf16 %v467_v23, %v467_v23  ;;  %v877_v23 = vld [vmem:[%s1144_s5 + $0x18] sm:$0xff] }
 0x3a0   : > { %837 = vmatmul.msk.bf16.vlgmr.msra.gmra.mxu3 %vm469_vm9, %v468_v24  ;;  %v876_v24 = vld [vmem:[%s1144_s5 + $0x10] sm:$0xff] }
 0x3a1   : > { %641 = vmatpush.bf16.xpose.msra.mxu3 %v632_v25  ;;  %v875_v25 = vld [vmem:[%s1144_s5 + $0x8] sm:$0xff] }
 0x3a4   : > { %v563_v27 = vpop.permute.xlu2 %562 }
 0x3a5   : > { %v568_v28 = vsel %vm436_vm7, %v563_v27, 0 }
 0x3a6   : > { %577 = vmatpush.bf16.xpose.msrb.mxu0 %v568_v28 }
 0x3ad   : > { %842 = vmatmul.msk.bf16.vlgmr.msrb.gmra.mxu0 %vm436_vm7, %v561_v29 }
 0x3ae   : > { %731 = vmatpush.bf16.msra.mxu0 %v877_v23 }
 0x3b0   : > { %839 = vmatmul.msk.bf16.vlgmr.msrb.gmra.mxu3 %vm436_vm7, %v496_v20 }
 0x3b2   : > { %732 = vmatpush.bf16.msra.mxu0 %v876_v24 }
 0x3b6   : > { %733 = vmatpush.bf16.msra.mxu0 %v875_v25 }
 0x3c0   : > { %845 = vmatmul.msk.bf16.vlgmr.msra.gmra.mxu3 %vm436_vm7, %v625_v26  ;;  %v874_v26 = vld [vmem:[%s1144_s5] sm:$0xff] }
 0x3c1   : > { %734 = vmatpush.bf16.msra.mxu0 %v874_v26 }
 0x423   : > { %v486_v30 = vpop.f32.mrf.mxu3 }
 0x424   : > { %491 = vst.msk [vmem:[#allocation2] sm:$0xf] %vm490_vm10, %v486_v30 }
 0x42a   : > { %v579_v32 = vpop.f32.mrf.mxu0 }
 0x42b   : > { %v580_v33 = vadd.f32 %v841_v31, %v579_v32  ;;  %v488_v34 = vpop.f32.mrf.mxu3  ;;  %v896_v32 = vld [vmem:[%s1145_s6] ss:$0 sm:$0xff] }
 0x42d   : > { %v583_v35 = vsel %vm456_vm8, %v580_v33, -inf }
 0x42e   : > { %584 = vmax.xlane.f32.xlu0 %v583_v35 }
 0x432   : > { %v581_v37 = vpop.f32.mrf.mxu0 }
 0x433   : > { %v514_v38 = vpop.f32.mrf.mxu3 }
 0x434   : > { %v515_v39 = vadd.f32 %v838_v36, %v514_v38 }
 0x436   : > { %v518_v40 = vsel %vm456_vm8, %v515_v39, -inf }
 0x437   : > { %519 = vmax.xlane.f32.xlu2 %v518_v40 }
 0x43b   : > { %v516_v41 = vpop.f32.mrf.mxu3 }
 0x442   : > { %659 = vrot.lane.b32.xlu0 %v1059_v63, %s929_s14 }
 0x443   : > { %v643_v43 = vpop.f32.mrf.mxu3 }
 0x444   : > { %v644_v44 = vadd.f32 %v844_v42, %v643_v43 }
 0x446   : > { %v647_v45 = vsel %vm456_vm8, %v644_v44, -inf }
 0x447   : > { %648 = vmax.xlane.f32.xlu1 %v647_v45 }
 0x44b   : > { %v645_v46 = vpop.f32.mrf.mxu3 }
 0x4a1   : > { %v585_v57 = vpop.xlane.xlu0 %584 }
 0x4a2   : > { %v586_v58 = vsub.f32 %v580_v33, %v585_v57 }
 0x4a4   : > { %v587_v59 = vmul.f32 1.442695, %v586_v58 }
 0x4aa   : > { %v520_v47 = vpop.xlane.xlu2 %519 }
 0x4ab   : > { %v521_v48 = vsub.f32 %v515_v39, %v520_v47 }
 0x4ad   : > { %v522_v49 = vmul.f32 1.442695, %v521_v48 }
 0x4af   : > { %905 = vpow2.f32 %v522_v49 }
 0x4b4   : > { %v660_v3 = vpop.permute.xlu0 %659 }
 0x4b5   : > { %v906_v50 = vpop.eup %905  ;;  %v665_v8 = vsel %vm473_vm6, %v660_v3, 0 }
 0x4b6   : > { %v524_v51 = vsel %vm456_vm8, %v906_v50, 0.0 }
 0x4b7   : > { %525 = vadd.xlane.f32.xlu1 %v524_v51 }
 0x4ba   : > { %v649_v52 = vpop.xlane.xlu1 %648 }
 0x4bb   : > { %v650_v53 = vsub.f32 %v644_v44, %v649_v52 }
 0x4bd   : > { %v651_v54 = vmul.f32 1.442695, %v650_v53 }
 0x4bf   : > { %907 = vpow2.f32 %v651_v54 }
 0x4c0   : > { %909 = vpow2.f32 %v587_v59 }
 0x4c5   : > { %v908_v55 = vpop.eup %907 }
 0x4c6   : > { %v653_v56 = vsel %vm456_vm8, %v908_v55, 0.0  ;;  %v910_v60 = vpop.eup %909 }
 0x4c7   : > { %654 = vadd.xlane.f32.xlu2 %v653_v56  ;;  %v589_v61 = vsel %vm456_vm8, %v910_v60, 0.0 }
 0x4d0   : > { %531 = vrot.lane.b32.xlu1 %v1059_v63, %s928_s13 }
 0x4df   : > { %595 = vrot.lane.b32.xlu2 %v1059_v63, %s930_s15 }
 0x4fa   : > { %590 = vadd.xlane.f32.xlu1 %v589_v61 }
 0x52a   : > { %v526_v62 = vpop.xlane.xlu1 %525 }
 0x52b   : > { %911 = vrcp.f32 %v526_v62 }
 0x531   : > { %v912_v2 = vpop.eup %911 }
 0x532   : > { %v528_v4 = vmul.f32 %v912_v2, %v906_v50 }
 0x534   : > { %v529_v9 = vpack.c.bf16 %v528_v4, %v528_v4 }
 0x53a   : > { %v655_v1 = vpop.xlane.xlu2 %654 }
 0x53b   : > { %913 = vrcp.f32 %v655_v1 }
 0x541   : > { %v914_v10 = vpop.eup %913 }
 0x542   : > { %v532_v5 = vpop.permute.xlu1 %531  ;;  %v596_v6 = vpop.permute.xlu2 %595  ;;  %v657_v11 = vmul.f32 %v914_v10, %v908_v55 }
 0x543   : > { %v537_v7 = vsel %vm473_vm6, %v532_v5, 0  ;;  %v601_v63 = vsel %vm473_vm6, %v596_v6, 0 }
 0x544   : > { %546 = vmatpush.bf16.msrb.mxu2 %v537_v7  ;;  %610 = vmatpush.bf16.msrb.mxu1 %v601_v63  ;;  %v658_v12 = vpack.c.bf16 %v657_v11, %v657_v11 }
 0x547   : > { %840 = vmatmul.msk.bf16.vlgmr.msrb.gmra.mxu2 %vm469_vm9, %v529_v9 }
 0x548   : > { %674 = vmatpush.bf16.msra.mxu2 %v665_v8 }
 0x557   : > { %846 = vmatmul.msk.bf16.vlgmr.msra.gmra.mxu2 %vm469_vm9, %v658_v12 }
 0x56d   : > { %v591_v13 = vpop.xlane.xlu1 %590 }
 0x56e   : > { %915 = vrcp.f32 %v591_v13 }
 0x574   : > { %v916_v14 = vpop.eup %915 }
 0x575   : > { %v593_v15 = vmul.f32 %v916_v14, %v910_v60 }
 0x577   : > { %v594_v16 = vpack.c.bf16 %v593_v15, %v593_v15 }
 0x579   : > { %843 = vmatmul.msk.bf16.vlgmr.msrb.gmra.mxu1 %vm469_vm9, %v594_v16 }
 0x5ca   : > { %v548_v17 = vpop.f32.mrf.mxu2 }
 0x5cb   : > { %553 = vrot.lane.b32.xlu0 %v548_v17, %s931_s18 }
 0x5d2   : > { %v550_v18 = vpop.f32.mrf.mxu2 }
 0x5da   : > { %v676_v19 = vpop.f32.mrf.mxu2 }
 0x5db   : > { %681 = vrot.lane.b32.xlu0 %v676_v19, %s926_s11 }
 0x5e2   : > { %v678_v20 = vpop.f32.mrf.mxu2 }
 0x5f6   : > { %v612_v21 = vpop.f32.mrf.mxu1 }
 0x5f7   : > { %617 = vrot.lane.b32.xlu2 %v612_v21, %s932_s19  ;;  %s300_s19 = scalar_lea.vmem %s1147_s8, %s800_s29 }
 0x5fe   : > { %v614_v22 = vpop.f32.mrf.mxu1 }
 0x63d   : > { %v554_v27 = vpop.permute.xlu0 %553 }
 0x63e   : > { %557 = vst.msk [vmem:[#allocation2] sm:$0xf] %vm556_vm11, %v554_v27 }
 0x64d   : > { %v682_v29 = vpop.permute.xlu0 %681 }
 0x651   : > { %v618_v28 = vpop.permute.xlu2 %617 }
 0x652   : > { %621 = vst.msk [vmem:[#allocation2] sm:$0xf] %vm620_vm12, %v618_v28 }
 0x653   : > { %685 = vst.msk [vmem:[#allocation2] sm:$0xf] %vm684_vm13, %v682_v29 }
 0x65a   : > { %v686_v30 = vld [vmem:[#allocation2] sm:$0xf] }
 0x65b   : > { %v687_v31 = vpack.c.bf16 %v686_v30, %v686_v30 }
 0x65d   : > { %863 = vmatmul.msk.bf16.vlgmr.msra.gmra.mxu0 %vm398_vm5, %v687_v31 }
 0x6da   : > { %v736_v33 = vpop.f32.mrf.mxu0 }
 0x6db   : > { %v737_v34 = vadd.f32 %v896_v32, %v736_v33 }
 0x6dd   : > { %v740_v35 = vadd.f32 %v737_v34, %v994_v0 }
 0x6df   : > { %741 = vst.msk [vmem:[%s300_s19] sm:$0xf] %vm305_vm0, %v740_v35 }
 0x6e2   : > { %v738_v36 = vpop.f32.mrf.mxu0 }
 0x6e3 PF: > { %s18_s27 = sadd.s32 1, %s923_s27  }
 0x6e4   : > { %p15_p4 = scmp.ge.s32.totalorder %s18_s27, 4  }
 0x6e6   :  { %17 = sbr.rel (!%p15_p4) target bundleno = 1 (0x1), region = 85 }

</bundles_post_ra>
